<compile_context>
chip_gen: v7x
topology: tpu7x:2x2x1
jax: 0.10.0
libtpu: 0.0.40
codegen_flags: <defaults>
</compile_context>

<pallas_src>
import functools

import jax
import jax.numpy as jnp
from jax.experimental import pallas as pl
from jax.experimental.pallas import tpu as pltpu


# ----------------------------- Pallas kernel --------------------------------

def _boxmask_fused_kernel(src_ref, bx_ref, bwt_ref, bb_ref, mx_ref, mw_ref,
                          mb_ref, bo_ref, mo_ref, ys_ref, *,
                          nbatch, cin, cout, s0, s_out):
    # ---------------- box branch: Linear (P, F) @ (F, 4*nc) + b -------------
    # Single MXU pass; issues in the vex slot and overlaps with the VPU conv
    # below.  (For production P, tile P over a "parallel" grid axis with the
    # full (F, 4*nc) weight block resident instead of one giant block.)
    bo_ref[...] = (
        jnp.dot(bx_ref[...], bwt_ref[...], preferred_element_type=jnp.float32)
        + bb_ref[...])

    # ---------------- mask branch: 1x1 conv as VPU broadcast-FMAs ----------
    # Layout: batch folded onto sublanes, flattened small spatial dim S0 on
    # lanes.  Hoist all SMEM scalar weight/bias reads out of the FMA chains.
    w = [[mw_ref[k, c] for c in range(cin)] for k in range(cout)]
    b = [mb_ref[k] for k in range(cout)]
    x = mx_ref[...]                                     # (N*Cin, S0)
    xrow = [x[r:r + 1, :] for r in range(nbatch * cin)]

    half = max(1, cin // 2)
    for n in range(nbatch):
        base = n * cin
        for k in range(cout):
            prods = [xrow[base + c] * w[k][c] for c in range(cin)]
            # Two partial sums -> half the serial add-dependency depth.
            acc0 = prods[0]
            for term in prods[1:half]:
                acc0 = acc0 + term
            if half < cin:
                acc1 = prods[half]
                for term in prods[half + 1:]:
                    acc1 = acc1 + term
                acc0 = acc0 + acc1
            ys_ref[n * cout + k:n * cout + k + 1, :] = acc0 + b[k]

    # ---------------- fused nearest-neighbour upsample ----------------------
    # out[:, j] = y[:, src[j]] done as a one-hot matmul (gather-via-MXU):
    # lane-dense (N*Cout, S_out) store, no HBM round-trip of the conv result.
    y = ys_ref[...]                                     # (N*Cout, S0) f32
    src = src_ref[...]                                  # (1, S_out) i32
    rows = jax.lax.broadcasted_iota(jnp.int32, (s0, s_out), 0)
    g = jnp.where(rows == src, 1.0, 0.0).astype(jnp.bfloat16)   # exact 0/1
    # Exact f32 selection regardless of MXU f32 pass mode: hi/lo bf16 split.
    y_hi = y.astype(jnp.bfloat16)
    y_lo = (y - y_hi.astype(jnp.float32)).astype(jnp.bfloat16)
    mo_ref[...] = (
        jnp.dot(y_hi, g, preferred_element_type=jnp.float32)
        + jnp.dot(y_lo, g, preferred_element_type=jnp.float32))


# ------------------------------ wrappers -------------------------------------

def _boxmask_pallas(src, box_x, box_wt, box_b_row, mask_x, mask_w, mask_b,
                    *, nbatch, cout, s_out):
    p = box_x.shape[0]
    c4 = box_wt.shape[1]
    cin = mask_w.shape[1]
    s0 = mask_x.shape[1]
    kernel = functools.partial(_boxmask_fused_kernel, nbatch=nbatch, cin=cin,
                               cout=cout, s0=s0, s_out=s_out)
    vmem = pltpu.MemorySpace.VMEM
    smem = pltpu.MemorySpace.SMEM
    return pl.pallas_call(
        kernel,
        out_shape=(jax.ShapeDtypeStruct((p, c4), jnp.float32),
                   jax.ShapeDtypeStruct((nbatch * cout, s_out), jnp.float32)),
        in_specs=[
            pl.BlockSpec(memory_space=vmem),   # src index row (1, S_out) i32
            pl.BlockSpec(memory_space=vmem),   # box features (P, F)
            pl.BlockSpec(memory_space=vmem),   # box weight^T (F, 4*nc)
            pl.BlockSpec(memory_space=vmem),   # box bias row (1, 4*nc)
            pl.BlockSpec(memory_space=vmem),   # mask features (N*Cin, S0)
            pl.BlockSpec(memory_space=smem),   # mask weight (Cout, Cin) scalars
            pl.BlockSpec(memory_space=smem),   # mask bias (Cout,) scalars
        ],
        out_specs=(pl.BlockSpec(memory_space=vmem),
                   pl.BlockSpec(memory_space=vmem)),
        scratch_shapes=[pltpu.VMEM((nbatch * cout, s0), jnp.float32)],
    )(src, box_x, box_wt, box_b_row, mask_x, mask_w, mask_b)


def prepare_params(raw):
    """Hoist transposes / reshapes / casts out of the per-call path."""
    return {
        "box_wt": jnp.asarray(raw["box_w"], jnp.float32).T,          # (F, 4*nc)
        "box_b_row": jnp.asarray(raw["box_b"], jnp.float32).reshape(1, -1),
        "mask_w": jnp.asarray(raw["mask_w"], jnp.float32),           # (nc, Cm)
        "mask_b": jnp.asarray(raw["mask_b"], jnp.float32),           # (nc,)
    }


@functools.partial(jax.jit,
                   static_argnames=("images_hw", "num_classes", "num_frames"))
def boxmask_eval_forward(box_feat_in, mask_feat_in, params, images_hw,
                         num_classes, num_frames):
    """Eval-mode BoxMask forward on synthetic intermediate features.

    box_feat_in : (P, F)              -- output of model.roi_heads...cls_score
    mask_feat_in: (N, Cm, D0, H0, W0) -- output of model.roi_heads.mask_head
    Returns (box_features (P, num_classes, 4),
             mask_features (N, num_classes, num_frames, H, W))
    """
    h, w = images_hw
    n, cm, d0, h0, w0 = mask_feat_in.shape
    t = num_frames
    s0 = d0 * h0 * w0
    s_out = t * h * w

    # Nearest-neighbour source index for every flattened output position,
    # floor rule == PyTorch F.interpolate mode='nearest' (NOT nearest-exact).
    # Depends only on static shapes -> constant-folded under jit.
    di = (jnp.arange(t, dtype=jnp.int32) * d0) // t
    hi = (jnp.arange(h, dtype=jnp.int32) * h0) // h
    wi = (jnp.arange(w, dtype=jnp.int32) * w0) // w
    src = (di[:, None, None] * (h0 * w0) + hi[None, :, None] * w0
           + wi[None, None, :]).reshape(1, s_out).astype(jnp.int32)

    box_x = box_feat_in.astype(jnp.float32)
    # Fold batch onto sublanes; flattened small spatial dim on lanes.
    mask_x = mask_feat_in.astype(jnp.float32).reshape(n * cm, s0)

    box_out, mask_out = _boxmask_pallas(
        src, box_x, params["box_wt"], params["box_b_row"], mask_x,
        params["mask_w"], params["mask_b"],
        nbatch=n, cout=num_classes, s_out=s_out)

    box_out = box_out.reshape(-1, num_classes, 4)
    mask_out = mask_out.reshape(-1, num_classes, t, h, w)   # free view
    return box_out, mask_out


# ----------------------- pure-JAX reference (test only) ----------------------

def nearest_interpolate_3d_ref(x, out_size):
    """F.interpolate(x, size=(D,H,W), mode='nearest') for NCDHW input."""
    n, c, d0, h0, w0 = x.shape
    d, h, w = out_size
    di = (jnp.arange(d) * d0) // d
    hi = (jnp.arange(h) * h0) // h
    wi = (jnp.arange(w) * w0) // w
    return x[:, :, di][:, :, :, hi][:, :, :, :, wi]


# --------------------------------- main --------------------------------------

if __name__ == "__main__":
    key = jax.random.PRNGKey(0)
    k1, k2, k3, k4 = jax.random.split(key, 4)

    # Small synthetic shapes.
    num_classes = 4
    num_frames = 4
    in_features = 32      # model.roi_heads.box_predictor.cls_score.in_features
    mask_in_ch = 8        # model.roi_heads.mask_predictor.conv5_mask.in_channels
    P = 8                 # number of proposals (pooled across batch)
    N = 2                 # batch
    H = W = 16            # images spatial size
    D0, H0, W0 = 2, 8, 8  # model mask-head output spatial size

    # Deterministic parameter init (mirrors nn.init.normal_(std=0.01) / zeros).
    raw_params = {
        "box_w": 0.01 * jax.random.normal(
            k1, (num_classes * 4, in_features), jnp.float32),
        "box_b": jnp.zeros((num_classes * 4,), jnp.float32),
        "mask_w": 0.01 * jax.random.normal(
            k2, (num_classes, mask_in_ch), jnp.float32),
        "mask_b": jnp.zeros((num_classes,), jnp.float32),
    }
    params = prepare_params(raw_params)

    # Synthetic intermediate features (stand-ins for the frozen model outputs).
    box_feat_in = jax.random.normal(k3, (P, in_features), jnp.float32)
    mask_feat_in = jax.random.normal(k4, (N, mask_in_ch, D0, H0, W0),
                                     jnp.float32)

    box_out, mask_out = boxmask_eval_forward(
        box_feat_in, mask_feat_in, params, (H, W), num_classes, num_frames)
    jax.block_until_ready((box_out, mask_out))

    # Cross-check against a pure-JAX reference in the ORIGINAL op order
    # (interpolate, then 1x1 conv), matching the PyTorch module.
    ref_box = (box_feat_in @ raw_params["box_w"].T + raw_params["box_b"]
               ).reshape(-1, num_classes, 4)
    mf = nearest_interpolate_3d_ref(mask_feat_in, (num_frames, H, W))
    ref_mask = (jnp.einsum("ncdhw,kc->nkdhw", mf, raw_params["mask_w"])
                + raw_params["mask_b"][None, :, None, None, None])
    ref_mask = ref_mask.reshape(-1, num_classes, num_frames, H, W)

    assert box_out.shape == (P, num_classes, 4)
    assert mask_out.shape == (N, num_classes, num_frames, H, W)
    assert jnp.allclose(box_out, ref_box, atol=1e-5)
    assert jnp.allclose(mask_out, ref_mask, atol=1e-5)

    print("KERNEL_OK")
</pallas_src>

<mosaic_0001>
module attributes {stable_mosaic.version = 11 : i64} {
  func.func @_boxmask_fused_kernel(%arg0: memref<1x1024xi32, #tpu.memory_space<vmem>>, %arg1: memref<8x32xf32, #tpu.memory_space<vmem>>, %arg2: memref<32x16xf32, #tpu.memory_space<vmem>>, %arg3: memref<1x16xf32, #tpu.memory_space<vmem>>, %arg4: memref<16x128xf32, #tpu.memory_space<vmem>>, %arg5: memref<4x8xf32, #tpu.memory_space<smem>>, %arg6: memref<4xf32, #tpu.memory_space<smem>>, %arg7: memref<8x16xf32, #tpu.memory_space<vmem>>, %arg8: memref<8x1024xf32, #tpu.memory_space<vmem>>, %arg9: memref<8x128xf32, #tpu.memory_space<vmem>>) attributes {dimension_semantics = [], scalar_prefetch = 0 : i64, scratch_operands = 1 : i64, tpu.core_type = #tpu.core_type<tc>} {
    %c0 = arith.constant 0 : index
    %c0_0 = arith.constant 0 : index
    %0 = vector.load %arg1[%c0, %c0_0] : memref<8x32xf32, #tpu.memory_space<vmem>>, vector<8x32xf32>
    %c0_1 = arith.constant 0 : index
    %c0_2 = arith.constant 0 : index
    %1 = vector.load %arg2[%c0_1, %c0_2] : memref<32x16xf32, #tpu.memory_space<vmem>>, vector<32x16xf32>
    %cst = arith.constant dense<0.000000e+00> : vector<8x16xf32>
    %2 = tpu.matmul %0, %1, %cst {dimension_numbers = #tpu.dot_dimension_numbers<[1], [0], [0], [1], [0, 0, 1, 1], [], []>} : vector<8x32xf32>, vector<32x16xf32>, vector<8x16xf32> -> vector<8x16xf32>
    %c0_3 = arith.constant 0 : index
    %c0_4 = arith.constant 0 : index
    %3 = vector.load %arg3[%c0_3, %c0_4] : memref<1x16xf32, #tpu.memory_space<vmem>>, vector<1x16xf32>
    %4 = vector.broadcast %3 : vector<1x16xf32> to vector<8x16xf32>
    %5 = arith.addf %2, %4 : vector<8x16xf32>
    %c0_5 = arith.constant 0 : index
    %c0_6 = arith.constant 0 : index
    %6 = vector.load %arg7[%c0_5, %c0_6] : memref<8x16xf32, #tpu.memory_space<vmem>>, vector<8x16xf32>
    tpu.vector_store %arg7[%c0_5, %c0_6], %5 {strides = array<i32>} : memref<8x16xf32, #tpu.memory_space<vmem>>, vector<8x16xf32>,
    %c0_7 = arith.constant 0 : index
    %c0_8 = arith.constant 0 : index
    %7 = memref.load %arg5[%c0_7, %c0_8] : memref<4x8xf32, #tpu.memory_space<smem>>
    %c0_9 = arith.constant 0 : index
    %c1 = arith.constant 1 : index
    %8 = memref.load %arg5[%c0_9, %c1] : memref<4x8xf32, #tpu.memory_space<smem>>
    %c0_10 = arith.constant 0 : index
    %c2 = arith.constant 2 : index
    %9 = memref.load %arg5[%c0_10, %c2] : memref<4x8xf32, #tpu.memory_space<smem>>
    %c0_11 = arith.constant 0 : index
    %c3 = arith.constant 3 : index
    %10 = memref.load %arg5[%c0_11, %c3] : memref<4x8xf32, #tpu.memory_space<smem>>
    %c0_12 = arith.constant 0 : index
    %c4 = arith.constant 4 : index
    %11 = memref.load %arg5[%c0_12, %c4] : memref<4x8xf32, #tpu.memory_space<smem>>
    %c0_13 = arith.constant 0 : index
    %c5 = arith.constant 5 : index
    %12 = memref.load %arg5[%c0_13, %c5] : memref<4x8xf32, #tpu.memory_space<smem>>
    %c0_14 = arith.constant 0 : index
    %c6 = arith.constant 6 : index
    %13 = memref.load %arg5[%c0_14, %c6] : memref<4x8xf32, #tpu.memory_space<smem>>
    %c0_15 = arith.constant 0 : index
    %c7 = arith.constant 7 : index
    %14 = memref.load %arg5[%c0_15, %c7] : memref<4x8xf32, #tpu.memory_space<smem>>
    %c1_16 = arith.constant 1 : index
    %c0_17 = arith.constant 0 : index
    %15 = memref.load %arg5[%c1_16, %c0_17] : memref<4x8xf32, #tpu.memory_space<smem>>
    %c1_18 = arith.constant 1 : index
    %c1_19 = arith.constant 1 : index
    %16 = memref.load %arg5[%c1_18, %c1_19] : memref<4x8xf32, #tpu.memory_space<smem>>
    %c1_20 = arith.constant 1 : index
    %c2_21 = arith.constant 2 : index
    %17 = memref.load %arg5[%c1_20, %c2_21] : memref<4x8xf32, #tpu.memory_space<smem>>
    %c1_22 = arith.constant 1 : index
    %c3_23 = arith.constant 3 : index
    %18 = memref.load %arg5[%c1_22, %c3_23] : memref<4x8xf32, #tpu.memory_space<smem>>
    %c1_24 = arith.constant 1 : index
    %c4_25 = arith.constant 4 : index
    %19 = memref.load %arg5[%c1_24, %c4_25] : memref<4x8xf32, #tpu.memory_space<smem>>
    %c1_26 = arith.constant 1 : index
    %c5_27 = arith.constant 5 : index
    %20 = memref.load %arg5[%c1_26, %c5_27] : memref<4x8xf32, #tpu.memory_space<smem>>
    %c1_28 = arith.constant 1 : index
    %c6_29 = arith.constant 6 : index
    %21 = memref.load %arg5[%c1_28, %c6_29] : memref<4x8xf32, #tpu.memory_space<smem>>
    %c1_30 = arith.constant 1 : index
    %c7_31 = arith.constant 7 : index
    %22 = memref.load %arg5[%c1_30, %c7_31] : memref<4x8xf32, #tpu.memory_space<smem>>
    %c2_32 = arith.constant 2 : index
    %c0_33 = arith.constant 0 : index
    %23 = memref.load %arg5[%c2_32, %c0_33] : memref<4x8xf32, #tpu.memory_space<smem>>
    %c2_34 = arith.constant 2 : index
    %c1_35 = arith.constant 1 : index
    %24 = memref.load %arg5[%c2_34, %c1_35] : memref<4x8xf32, #tpu.memory_space<smem>>
    %c2_36 = arith.constant 2 : index
    %c2_37 = arith.constant 2 : index
    %25 = memref.load %arg5[%c2_36, %c2_37] : memref<4x8xf32, #tpu.memory_space<smem>>
    %c2_38 = arith.constant 2 : index
    %c3_39 = arith.constant 3 : index
    %26 = memref.load %arg5[%c2_38, %c3_39] : memref<4x8xf32, #tpu.memory_space<smem>>
    %c2_40 = arith.constant 2 : index
    %c4_41 = arith.constant 4 : index
    %27 = memref.load %arg5[%c2_40, %c4_41] : memref<4x8xf32, #tpu.memory_space<smem>>
    %c2_42 = arith.constant 2 : index
    %c5_43 = arith.constant 5 : index
    %28 = memref.load %arg5[%c2_42, %c5_43] : memref<4x8xf32, #tpu.memory_space<smem>>
    %c2_44 = arith.constant 2 : index
    %c6_45 = arith.constant 6 : index
    %29 = memref.load %arg5[%c2_44, %c6_45] : memref<4x8xf32, #tpu.memory_space<smem>>
    %c2_46 = arith.constant 2 : index
    %c7_47 = arith.constant 7 : index
    %30 = memref.load %arg5[%c2_46, %c7_47] : memref<4x8xf32, #tpu.memory_space<smem>>
    %c3_48 = arith.constant 3 : index
    %c0_49 = arith.constant 0 : index
    %31 = memref.load %arg5[%c3_48, %c0_49] : memref<4x8xf32, #tpu.memory_space<smem>>
    %c3_50 = arith.constant 3 : index
    %c1_51 = arith.constant 1 : index
    %32 = memref.load %arg5[%c3_50, %c1_51] : memref<4x8xf32, #tpu.memory_space<smem>>
    %c3_52 = arith.constant 3 : index
    %c2_53 = arith.constant 2 : index
    %33 = memref.load %arg5[%c3_52, %c2_53] : memref<4x8xf32, #tpu.memory_space<smem>>
    %c3_54 = arith.constant 3 : index
    %c3_55 = arith.constant 3 : index
    %34 = memref.load %arg5[%c3_54, %c3_55] : memref<4x8xf32, #tpu.memory_space<smem>>
    %c3_56 = arith.constant 3 : index
    %c4_57 = arith.constant 4 : index
    %35 = memref.load %arg5[%c3_56, %c4_57] : memref<4x8xf32, #tpu.memory_space<smem>>
    %c3_58 = arith.constant 3 : index
    %c5_59 = arith.constant 5 : index
    %36 = memref.load %arg5[%c3_58, %c5_59] : memref<4x8xf32, #tpu.memory_space<smem>>
    %c3_60 = arith.constant 3 : index
    %c6_61 = arith.constant 6 : index
    %37 = memref.load %arg5[%c3_60, %c6_61] : memref<4x8xf32, #tpu.memory_space<smem>>
    %c3_62 = arith.constant 3 : index
    %c7_63 = arith.constant 7 : index
    %38 = memref.load %arg5[%c3_62, %c7_63] : memref<4x8xf32, #tpu.memory_space<smem>>
    %c0_64 = arith.constant 0 : index
    %39 = memref.load %arg6[%c0_64] : memref<4xf32, #tpu.memory_space<smem>>
    %c1_65 = arith.constant 1 : index
    %40 = memref.load %arg6[%c1_65] : memref<4xf32, #tpu.memory_space<smem>>
    %c2_66 = arith.constant 2 : index
    %41 = memref.load %arg6[%c2_66] : memref<4xf32, #tpu.memory_space<smem>>
    %c3_67 = arith.constant 3 : index
    %42 = memref.load %arg6[%c3_67] : memref<4xf32, #tpu.memory_space<smem>>
    %c0_68 = arith.constant 0 : index
    %c0_69 = arith.constant 0 : index
    %43 = vector.load %arg4[%c0_68, %c0_69] : memref<16x128xf32, #tpu.memory_space<vmem>>, vector<16x128xf32>
    %44 = vector.extract_strided_slice %43 {offsets = [0, 0], sizes = [1, 128], strides = [1, 1]} : vector<16x128xf32> to vector<1x128xf32>
    %45 = vector.extract_strided_slice %43 {offsets = [1, 0], sizes = [1, 128], strides = [1, 1]} : vector<16x128xf32> to vector<1x128xf32>
    %46 = vector.extract_strided_slice %43 {offsets = [2, 0], sizes = [1, 128], strides = [1, 1]} : vector<16x128xf32> to vector<1x128xf32>
    %47 = vector.extract_strided_slice %43 {offsets = [3, 0], sizes = [1, 128], strides = [1, 1]} : vector<16x128xf32> to vector<1x128xf32>
    %48 = vector.extract_strided_slice %43 {offsets = [4, 0], sizes = [1, 128], strides = [1, 1]} : vector<16x128xf32> to vector<1x128xf32>
    %49 = vector.extract_strided_slice %43 {offsets = [5, 0], sizes = [1, 128], strides = [1, 1]} : vector<16x128xf32> to vector<1x128xf32>
    %50 = vector.extract_strided_slice %43 {offsets = [6, 0], sizes = [1, 128], strides = [1, 1]} : vector<16x128xf32> to vector<1x128xf32>
    %51 = vector.extract_strided_slice %43 {offsets = [7, 0], sizes = [1, 128], strides = [1, 1]} : vector<16x128xf32> to vector<1x128xf32>
    %52 = vector.extract_strided_slice %43 {offsets = [8, 0], sizes = [1, 128], strides = [1, 1]} : vector<16x128xf32> to vector<1x128xf32>
    %53 = vector.extract_strided_slice %43 {offsets = [9, 0], sizes = [1, 128], strides = [1, 1]} : vector<16x128xf32> to vector<1x128xf32>
    %54 = vector.extract_strided_slice %43 {offsets = [10, 0], sizes = [1, 128], strides = [1, 1]} : vector<16x128xf32> to vector<1x128xf32>
    %55 = vector.extract_strided_slice %43 {offsets = [11, 0], sizes = [1, 128], strides = [1, 1]} : vector<16x128xf32> to vector<1x128xf32>
    %56 = vector.extract_strided_slice %43 {offsets = [12, 0], sizes = [1, 128], strides = [1, 1]} : vector<16x128xf32> to vector<1x128xf32>
    %57 = vector.extract_strided_slice %43 {offsets = [13, 0], sizes = [1, 128], strides = [1, 1]} : vector<16x128xf32> to vector<1x128xf32>
    %58 = vector.extract_strided_slice %43 {offsets = [14, 0], sizes = [1, 128], strides = [1, 1]} : vector<16x128xf32> to vector<1x128xf32>
    %59 = vector.extract_strided_slice %43 {offsets = [15, 0], sizes = [1, 128], strides = [1, 1]} : vector<16x128xf32> to vector<1x128xf32>
    %60 = vector.broadcast %7 : f32 to vector<1x128xf32>
    %61 = arith.mulf %44, %60 : vector<1x128xf32>
    %62 = vector.broadcast %8 : f32 to vector<1x128xf32>
    %63 = arith.mulf %45, %62 : vector<1x128xf32>
    %64 = vector.broadcast %9 : f32 to vector<1x128xf32>
    %65 = arith.mulf %46, %64 : vector<1x128xf32>
    %66 = vector.broadcast %10 : f32 to vector<1x128xf32>
    %67 = arith.mulf %47, %66 : vector<1x128xf32>
    %68 = vector.broadcast %11 : f32 to vector<1x128xf32>
    %69 = arith.mulf %48, %68 : vector<1x128xf32>
    %70 = vector.broadcast %12 : f32 to vector<1x128xf32>
    %71 = arith.mulf %49, %70 : vector<1x128xf32>
    %72 = vector.broadcast %13 : f32 to vector<1x128xf32>
    %73 = arith.mulf %50, %72 : vector<1x128xf32>
    %74 = vector.broadcast %14 : f32 to vector<1x128xf32>
    %75 = arith.mulf %51, %74 : vector<1x128xf32>
    %76 = arith.addf %61, %63 : vector<1x128xf32>
    %77 = arith.addf %76, %65 : vector<1x128xf32>
    %78 = arith.addf %77, %67 : vector<1x128xf32>
    %79 = arith.addf %69, %71 : vector<1x128xf32>
    %80 = arith.addf %79, %73 : vector<1x128xf32>
    %81 = arith.addf %80, %75 : vector<1x128xf32>
    %82 = arith.addf %78, %81 : vector<1x128xf32>
    %83 = vector.broadcast %39 : f32 to vector<1x128xf32>
    %84 = arith.addf %82, %83 : vector<1x128xf32>
    %c0_70 = arith.constant 0 : index
    %c0_71 = arith.constant 0 : index
    %85 = vector.load %arg9[%c0_70, %c0_71] : memref<8x128xf32, #tpu.memory_space<vmem>>, vector<1x128xf32>
    tpu.vector_store %arg9[%c0_70, %c0_71], %84 {strides = array<i32>} : memref<8x128xf32, #tpu.memory_space<vmem>>, vector<1x128xf32>,
    %86 = vector.broadcast %15 : f32 to vector<1x128xf32>
    %87 = arith.mulf %44, %86 : vector<1x128xf32>
    %88 = vector.broadcast %16 : f32 to vector<1x128xf32>
    %89 = arith.mulf %45, %88 : vector<1x128xf32>
    %90 = vector.broadcast %17 : f32 to vector<1x128xf32>
    %91 = arith.mulf %46, %90 : vector<1x128xf32>
    %92 = vector.broadcast %18 : f32 to vector<1x128xf32>
    %93 = arith.mulf %47, %92 : vector<1x128xf32>
    %94 = vector.broadcast %19 : f32 to vector<1x128xf32>
    %95 = arith.mulf %48, %94 : vector<1x128xf32>
    %96 = vector.broadcast %20 : f32 to vector<1x128xf32>
    %97 = arith.mulf %49, %96 : vector<1x128xf32>
    %98 = vector.broadcast %21 : f32 to vector<1x128xf32>
    %99 = arith.mulf %50, %98 : vector<1x128xf32>
    %100 = vector.broadcast %22 : f32 to vector<1x128xf32>
    %101 = arith.mulf %51, %100 : vector<1x128xf32>
    %102 = arith.addf %87, %89 : vector<1x128xf32>
    %103 = arith.addf %102, %91 : vector<1x128xf32>
    %104 = arith.addf %103, %93 : vector<1x128xf32>
    %105 = arith.addf %95, %97 : vector<1x128xf32>
    %106 = arith.addf %105, %99 : vector<1x128xf32>
    %107 = arith.addf %106, %101 : vector<1x128xf32>
    %108 = arith.addf %104, %107 : vector<1x128xf32>
    %109 = vector.broadcast %40 : f32 to vector<1x128xf32>
    %110 = arith.addf %108, %109 : vector<1x128xf32>
    %c1_72 = arith.constant 1 : index
    %c0_73 = arith.constant 0 : index
    %111 = vector.load %arg9[%c1_72, %c0_73] : memref<8x128xf32, #tpu.memory_space<vmem>>, vector<1x128xf32>
    tpu.vector_store %arg9[%c1_72, %c0_73], %110 {strides = array<i32>} : memref<8x128xf32, #tpu.memory_space<vmem>>, vector<1x128xf32>,
    %112 = vector.broadcast %23 : f32 to vector<1x128xf32>
    %113 = arith.mulf %44, %112 : vector<1x128xf32>
    %114 = vector.broadcast %24 : f32 to vector<1x128xf32>
    %115 = arith.mulf %45, %114 : vector<1x128xf32>
    %116 = vector.broadcast %25 : f32 to vector<1x128xf32>
    %117 = arith.mulf %46, %116 : vector<1x128xf32>
    %118 = vector.broadcast %26 : f32 to vector<1x128xf32>
    %119 = arith.mulf %47, %118 : vector<1x128xf32>
    %120 = vector.broadcast %27 : f32 to vector<1x128xf32>
    %121 = arith.mulf %48, %120 : vector<1x128xf32>
    %122 = vector.broadcast %28 : f32 to vector<1x128xf32>
    %123 = arith.mulf %49, %122 : vector<1x128xf32>
    %124 = vector.broadcast %29 : f32 to vector<1x128xf32>
    %125 = arith.mulf %50, %124 : vector<1x128xf32>
    %126 = vector.broadcast %30 : f32 to vector<1x128xf32>
    %127 = arith.mulf %51, %126 : vector<1x128xf32>
    %128 = arith.addf %113, %115 : vector<1x128xf32>
    %129 = arith.addf %128, %117 : vector<1x128xf32>
    %130 = arith.addf %129, %119 : vector<1x128xf32>
    %131 = arith.addf %121, %123 : vector<1x128xf32>
    %132 = arith.addf %131, %125 : vector<1x128xf32>
    %133 = arith.addf %132, %127 : vector<1x128xf32>
    %134 = arith.addf %130, %133 : vector<1x128xf32>
    %135 = vector.broadcast %41 : f32 to vector<1x128xf32>
    %136 = arith.addf %134, %135 : vector<1x128xf32>
    %c2_74 = arith.constant 2 : index
    %c0_75 = arith.constant 0 : index
    %137 = vector.load %arg9[%c2_74, %c0_75] : memref<8x128xf32, #tpu.memory_space<vmem>>, vector<1x128xf32>
    tpu.vector_store %arg9[%c2_74, %c0_75], %136 {strides = array<i32>} : memref<8x128xf32, #tpu.memory_space<vmem>>, vector<1x128xf32>,
    %138 = vector.broadcast %31 : f32 to vector<1x128xf32>
    %139 = arith.mulf %44, %138 : vector<1x128xf32>
    %140 = vector.broadcast %32 : f32 to vector<1x128xf32>
    %141 = arith.mulf %45, %140 : vector<1x128xf32>
    %142 = vector.broadcast %33 : f32 to vector<1x128xf32>
    %143 = arith.mulf %46, %142 : vector<1x128xf32>
    %144 = vector.broadcast %34 : f32 to vector<1x128xf32>
    %145 = arith.mulf %47, %144 : vector<1x128xf32>
    %146 = vector.broadcast %35 : f32 to vector<1x128xf32>
    %147 = arith.mulf %48, %146 : vector<1x128xf32>
    %148 = vector.broadcast %36 : f32 to vector<1x128xf32>
    %149 = arith.mulf %49, %148 : vector<1x128xf32>
    %150 = vector.broadcast %37 : f32 to vector<1x128xf32>
    %151 = arith.mulf %50, %150 : vector<1x128xf32>
    %152 = vector.broadcast %38 : f32 to vector<1x128xf32>
    %153 = arith.mulf %51, %152 : vector<1x128xf32>
    %154 = arith.addf %139, %141 : vector<1x128xf32>
    %155 = arith.addf %154, %143 : vector<1x128xf32>
    %156 = arith.addf %155, %145 : vector<1x128xf32>
    %157 = arith.addf %147, %149 : vector<1x128xf32>
    %158 = arith.addf %157, %151 : vector<1x128xf32>
    %159 = arith.addf %158, %153 : vector<1x128xf32>
    %160 = arith.addf %156, %159 : vector<1x128xf32>
    %161 = vector.broadcast %42 : f32 to vector<1x128xf32>
    %162 = arith.addf %160, %161 : vector<1x128xf32>
    %c3_76 = arith.constant 3 : index
    %c0_77 = arith.constant 0 : index
    %163 = vector.load %arg9[%c3_76, %c0_77] : memref<8x128xf32, #tpu.memory_space<vmem>>, vector<1x128xf32>
    tpu.vector_store %arg9[%c3_76, %c0_77], %162 {strides = array<i32>} : memref<8x128xf32, #tpu.memory_space<vmem>>, vector<1x128xf32>,
    %164 = vector.broadcast %7 : f32 to vector<1x128xf32>
    %165 = arith.mulf %52, %164 : vector<1x128xf32>
    %166 = vector.broadcast %8 : f32 to vector<1x128xf32>
    %167 = arith.mulf %53, %166 : vector<1x128xf32>
    %168 = vector.broadcast %9 : f32 to vector<1x128xf32>
    %169 = arith.mulf %54, %168 : vector<1x128xf32>
    %170 = vector.broadcast %10 : f32 to vector<1x128xf32>
    %171 = arith.mulf %55, %170 : vector<1x128xf32>
    %172 = vector.broadcast %11 : f32 to vector<1x128xf32>
    %173 = arith.mulf %56, %172 : vector<1x128xf32>
    %174 = vector.broadcast %12 : f32 to vector<1x128xf32>
    %175 = arith.mulf %57, %174 : vector<1x128xf32>
    %176 = vector.broadcast %13 : f32 to vector<1x128xf32>
    %177 = arith.mulf %58, %176 : vector<1x128xf32>
    %178 = vector.broadcast %14 : f32 to vector<1x128xf32>
    %179 = arith.mulf %59, %178 : vector<1x128xf32>
    %180 = arith.addf %165, %167 : vector<1x128xf32>
    %181 = arith.addf %180, %169 : vector<1x128xf32>
    %182 = arith.addf %181, %171 : vector<1x128xf32>
    %183 = arith.addf %173, %175 : vector<1x128xf32>
    %184 = arith.addf %183, %177 : vector<1x128xf32>
    %185 = arith.addf %184, %179 : vector<1x128xf32>
    %186 = arith.addf %182, %185 : vector<1x128xf32>
    %187 = vector.broadcast %39 : f32 to vector<1x128xf32>
    %188 = arith.addf %186, %187 : vector<1x128xf32>
    %c4_78 = arith.constant 4 : index
    %c0_79 = arith.constant 0 : index
    %189 = vector.load %arg9[%c4_78, %c0_79] : memref<8x128xf32, #tpu.memory_space<vmem>>, vector<1x128xf32>
    tpu.vector_store %arg9[%c4_78, %c0_79], %188 {strides = array<i32>} : memref<8x128xf32, #tpu.memory_space<vmem>>, vector<1x128xf32>,
    %190 = vector.broadcast %15 : f32 to vector<1x128xf32>
    %191 = arith.mulf %52, %190 : vector<1x128xf32>
    %192 = vector.broadcast %16 : f32 to vector<1x128xf32>
    %193 = arith.mulf %53, %192 : vector<1x128xf32>
    %194 = vector.broadcast %17 : f32 to vector<1x128xf32>
    %195 = arith.mulf %54, %194 : vector<1x128xf32>
    %196 = vector.broadcast %18 : f32 to vector<1x128xf32>
    %197 = arith.mulf %55, %196 : vector<1x128xf32>
    %198 = vector.broadcast %19 : f32 to vector<1x128xf32>
    %199 = arith.mulf %56, %198 : vector<1x128xf32>
    %200 = vector.broadcast %20 : f32 to vector<1x128xf32>
    %201 = arith.mulf %57, %200 : vector<1x128xf32>
    %202 = vector.broadcast %21 : f32 to vector<1x128xf32>
    %203 = arith.mulf %58, %202 : vector<1x128xf32>
    %204 = vector.broadcast %22 : f32 to vector<1x128xf32>
    %205 = arith.mulf %59, %204 : vector<1x128xf32>
    %206 = arith.addf %191, %193 : vector<1x128xf32>
    %207 = arith.addf %206, %195 : vector<1x128xf32>
    %208 = arith.addf %207, %197 : vector<1x128xf32>
    %209 = arith.addf %199, %201 : vector<1x128xf32>
    %210 = arith.addf %209, %203 : vector<1x128xf32>
    %211 = arith.addf %210, %205 : vector<1x128xf32>
    %212 = arith.addf %208, %211 : vector<1x128xf32>
    %213 = vector.broadcast %40 : f32 to vector<1x128xf32>
    %214 = arith.addf %212, %213 : vector<1x128xf32>
    %c5_80 = arith.constant 5 : index
    %c0_81 = arith.constant 0 : index
    %215 = vector.load %arg9[%c5_80, %c0_81] : memref<8x128xf32, #tpu.memory_space<vmem>>, vector<1x128xf32>
    tpu.vector_store %arg9[%c5_80, %c0_81], %214 {strides = array<i32>} : memref<8x128xf32, #tpu.memory_space<vmem>>, vector<1x128xf32>,
    %216 = vector.broadcast %23 : f32 to vector<1x128xf32>
    %217 = arith.mulf %52, %216 : vector<1x128xf32>
    %218 = vector.broadcast %24 : f32 to vector<1x128xf32>
    %219 = arith.mulf %53, %218 : vector<1x128xf32>
    %220 = vector.broadcast %25 : f32 to vector<1x128xf32>
    %221 = arith.mulf %54, %220 : vector<1x128xf32>
    %222 = vector.broadcast %26 : f32 to vector<1x128xf32>
    %223 = arith.mulf %55, %222 : vector<1x128xf32>
    %224 = vector.broadcast %27 : f32 to vector<1x128xf32>
    %225 = arith.mulf %56, %224 : vector<1x128xf32>
    %226 = vector.broadcast %28 : f32 to vector<1x128xf32>
    %227 = arith.mulf %57, %226 : vector<1x128xf32>
    %228 = vector.broadcast %29 : f32 to vector<1x128xf32>
    %229 = arith.mulf %58, %228 : vector<1x128xf32>
    %230 = vector.broadcast %30 : f32 to vector<1x128xf32>
    %231 = arith.mulf %59, %230 : vector<1x128xf32>
    %232 = arith.addf %217, %219 : vector<1x128xf32>
    %233 = arith.addf %232, %221 : vector<1x128xf32>
    %234 = arith.addf %233, %223 : vector<1x128xf32>
    %235 = arith.addf %225, %227 : vector<1x128xf32>
    %236 = arith.addf %235, %229 : vector<1x128xf32>
    %237 = arith.addf %236, %231 : vector<1x128xf32>
    %238 = arith.addf %234, %237 : vector<1x128xf32>
    %239 = vector.broadcast %41 : f32 to vector<1x128xf32>
    %240 = arith.addf %238, %239 : vector<1x128xf32>
    %c6_82 = arith.constant 6 : index
    %c0_83 = arith.constant 0 : index
    %241 = vector.load %arg9[%c6_82, %c0_83] : memref<8x128xf32, #tpu.memory_space<vmem>>, vector<1x128xf32>
    tpu.vector_store %arg9[%c6_82, %c0_83], %240 {strides = array<i32>} : memref<8x128xf32, #tpu.memory_space<vmem>>, vector<1x128xf32>,
    %242 = vector.broadcast %31 : f32 to vector<1x128xf32>
    %243 = arith.mulf %52, %242 : vector<1x128xf32>
    %244 = vector.broadcast %32 : f32 to vector<1x128xf32>
    %245 = arith.mulf %53, %244 : vector<1x128xf32>
    %246 = vector.broadcast %33 : f32 to vector<1x128xf32>
    %247 = arith.mulf %54, %246 : vector<1x128xf32>
    %248 = vector.broadcast %34 : f32 to vector<1x128xf32>
    %249 = arith.mulf %55, %248 : vector<1x128xf32>
    %250 = vector.broadcast %35 : f32 to vector<1x128xf32>
    %251 = arith.mulf %56, %250 : vector<1x128xf32>
    %252 = vector.broadcast %36 : f32 to vector<1x128xf32>
    %253 = arith.mulf %57, %252 : vector<1x128xf32>
    %254 = vector.broadcast %37 : f32 to vector<1x128xf32>
    %255 = arith.mulf %58, %254 : vector<1x128xf32>
    %256 = vector.broadcast %38 : f32 to vector<1x128xf32>
    %257 = arith.mulf %59, %256 : vector<1x128xf32>
    %258 = arith.addf %243, %245 : vector<1x128xf32>
    %259 = arith.addf %258, %247 : vector<1x128xf32>
    %260 = arith.addf %259, %249 : vector<1x128xf32>
    %261 = arith.addf %251, %253 : vector<1x128xf32>
    %262 = arith.addf %261, %255 : vector<1x128xf32>
    %263 = arith.addf %262, %257 : vector<1x128xf32>
    %264 = arith.addf %260, %263 : vector<1x128xf32>
    %265 = vector.broadcast %42 : f32 to vector<1x128xf32>
    %266 = arith.addf %264, %265 : vector<1x128xf32>
    %c7_84 = arith.constant 7 : index
    %c0_85 = arith.constant 0 : index
    %267 = vector.load %arg9[%c7_84, %c0_85] : memref<8x128xf32, #tpu.memory_space<vmem>>, vector<1x128xf32>
    tpu.vector_store %arg9[%c7_84, %c0_85], %266 {strides = array<i32>} : memref<8x128xf32, #tpu.memory_space<vmem>>, vector<1x128xf32>,
    %c0_86 = arith.constant 0 : index
    %c0_87 = arith.constant 0 : index
    %268 = vector.load %arg9[%c0_86, %c0_87] : memref<8x128xf32, #tpu.memory_space<vmem>>, vector<8x128xf32>
    %c0_88 = arith.constant 0 : index
    %c0_89 = arith.constant 0 : index
    %269 = vector.load %arg0[%c0_88, %c0_89] : memref<1x1024xi32, #tpu.memory_space<vmem>>, vector<1x1024xi32>
    %270 = tpu.iota {dimensions = array<i32: 0>} : vector<128x1024xi32>
    %271 = vector.broadcast %269 : vector<1x1024xi32> to vector<128x1024xi32>
    %272 = arith.cmpi eq, %270, %271 : vector<128x1024xi32>
    %cst_90 = arith.constant 1.000000e+00 : f32
    %cst_91 = arith.constant 0.000000e+00 : f32
    %273 = vector.broadcast %cst_90 : f32 to vector<128x1024xf32>
    %274 = vector.broadcast %cst_91 : f32 to vector<128x1024xf32>
    %275 = arith.select %272, %273, %274 : vector<128x1024xi1>, vector<128x1024xf32>
    %276 = arith.truncf %275 : vector<128x1024xf32> to vector<128x1024xbf16>
    %277 = arith.truncf %268 : vector<8x128xf32> to vector<8x128xbf16>
    %278 = arith.extf %277 : vector<8x128xbf16> to vector<8x128xf32>
    %279 = arith.subf %268, %278 : vector<8x128xf32>
    %280 = arith.truncf %279 : vector<8x128xf32> to vector<8x128xbf16>
    %cst_92 = arith.constant dense<0.000000e+00> : vector<8x1024xf32>
    %281 = tpu.matmul %277, %276, %cst_92 {dimension_numbers = #tpu.dot_dimension_numbers<[1], [0], [0], [1], [0, 0, 1, 1], [], []>} : vector<8x128xbf16>, vector<128x1024xbf16>, vector<8x1024xf32> -> vector<8x1024xf32>
    %cst_93 = arith.constant dense<0.000000e+00> : vector<8x1024xf32>
    %282 = tpu.matmul %280, %276, %cst_93 {dimension_numbers = #tpu.dot_dimension_numbers<[1], [0], [0], [1], [0, 0, 1, 1], [], []>} : vector<8x128xbf16>, vector<128x1024xbf16>, vector<8x1024xf32> -> vector<8x1024xf32>
    %283 = arith.addf %281, %282 : vector<8x1024xf32>
    %c0_94 = arith.constant 0 : index
    %c0_95 = arith.constant 0 : index
    %284 = vector.load %arg8[%c0_94, %c0_95] : memref<8x1024xf32, #tpu.memory_space<vmem>>, vector<8x1024xf32>
    tpu.vector_store %arg8[%c0_94, %c0_95], %283 {strides = array<i32>} : memref<8x1024xf32, #tpu.memory_space<vmem>>, vector<8x1024xf32>,
    return
  }
}

</mosaic_0001>

<bundles_post_ra>
// kernel: boxmask_eval_forward.1
= control target key start
LH: loop header
LB: loop body
LE: loop exit
PB: predicated region body
PF: predicated region fallthrough
CT: control target
= control target key end

     0   :  { %s3210_s0 = inlined_call_operand.vmem [shape: s32[1,1024], index: 0, kind: input, shape index: {}]   ;;  %s3211_s1 = inlined_call_operand.vmem [shape: f32[8,32], index: 1, kind: input, shape index: {}]   ;;  %s3212_s2 = inlined_call_operand.vmem [shape: f32[32,16], index: 2, kind: input, shape index: {}]   ;;  %s3213_s3 = inlined_call_operand.vmem [shape: f32[1,16], index: 3, kind: input, shape index: {}]   ;;  %s3214_s4 = inlined_call_operand.vmem [shape: f32[16,128], index: 4, kind: input, shape index: {}]   ;;  %s3215_s5 = inlined_call_operand.vmem [shape: f32[4,8], index: 5, kind: input, shape index: {}]   ;;  %s3216_s6 = inlined_call_operand.vmem [shape: f32[4], index: 6, kind: input, shape index: {}]   ;;  %s3217_s7 = inlined_call_operand.vmem [shape: f32[8,16], index: 7, kind: output, shape index: {0}]   ;;  %s3218_s8 = inlined_call_operand.vmem [shape: f32[8,1024], index: 8, kind: output, shape index: {1}]  }
   0x1   :  { %3338 = sst [smem:[#allocation38_spill]] %s3213_s3 }
   0x2   :  { %3339 = sst [smem:[#allocation39_spill]] %s3217_s7 }
   0x3   :  { %3340 = sst [smem:[#allocation40_spill]] %s3218_s8 }
   0x4   :  { %14 = vsyncpa [#allocation4], 0  ;;  %s32_s29 = sshll.u32 %s3215_s5, 4  ;;  %s33_s29 = int_to_ptr.vmem [resolvable:$true] %s32_s29 }
   0x5   :  { %15 = vsyncpa [#allocation6], 0  ;;  %s42_s10 = sshll.u32 %s3216_s6, 4  ;;  %s1578_s11 = scalar_lea.vmem %s33_s29, 64  ;;  %s43_s10 = int_to_ptr.vmem [resolvable:$true] %s42_s10 }
   0x6   :  { %p1579_p0 = scmp.ne.s32.totalorder %s33_s29, %s1578_s11  ;;  %p1583_p1 = scmp.lt.s32.totalorder %s33_s29, %s33_s29 }
   0x7   :  { %p1584_p2 = scmp.lt.s32.totalorder %s1578_s11, %s1578_s11 }
   0x9   :  { %p1585_p3 = por %p1584_p2, %p1583_p1 }
   0xb   :  { %p1586_p4 = pnand %p1585_p3, %p1579_p0 }
   0xd   :  { %1589 = shalt.err (!%p1586_p4)
}
   0xe   :  { %s1606_s12 = smov [#allocation3]   ;;  %s1590_s13 = scalar_lea.vmem %s43_s10, 16 }
   0xf   :  { %35 = dma.vmem_to_smem %s33_s29, 64, %s1606_s12, [#allocation4]  }
  0x10   :  { %p1591_p5 = scmp.ne.s32.totalorder %s43_s10, %s1590_s13  ;;  %p1595_p6 = scmp.lt.s32.totalorder %s43_s10, %s43_s10 }
  0x11   :  { %p1596_p7 = scmp.lt.s32.totalorder %s1590_s13, %s1590_s13 }
  0x13   :  { %p1597_p8 = por %p1596_p7, %p1595_p6 }
  0x15   :  { %p1598_p9 = pnand %p1597_p8, %p1591_p5 }
  0x17   :  { %1601 = shalt.err (!%p1598_p9)
}
  0x18   :  { %s1607_s5 = smov [#allocation5]  }
  0x19   :  { %45 = dma.vmem_to_smem %s43_s10, 16, %s1607_s5, [#allocation6]  }
  0x1a   :  { %1602 = dma.done.wait [#allocation4], 64  }
  0x1b   :  { %1603 = vsyncadd [#allocation4], 4294967232 }
  0x1c   :  { %1604 = dma.done.wait [#allocation6], 16  }
  0x1d   :  { %1605 = vsyncadd [#allocation6], 4294967280 }
  0x1e   :  { %52 = sfence }
  0x1f   :  { %v55_v0 = vld [vmem:[%s3212_s2] sm:$0xff]  ;;  %v56_v1 = vld [vmem:[%s3212_s2 + $0x8] sm:$0xff]  ;;  %v57_v2 = vld [vmem:[%s3212_s2 + $0x10] sm:$0xff]  ;;  %v522_v3 = vlaneseq  ;;  %v1608_v4 = vmov 0.0|0.0   ;;  %vm1609_vm0 = vmmov 0   ;;  %v1610_v7 = vmov 0.0  }
  0x20   :  { %1549 = vmatprep.subr.bf16.mxu0 %v1608_v4  ;;  %v1550_v5 = vpack.c.bf16 %v56_v1, %v55_v0  ;;  %v58_v6 = vld [vmem:[%s3212_s2 + $0x18] sm:$0xff]  ;;  %1546 = vmatprep.mubr.msk.f32.mxu0 %vm1609_vm0, %v1610_v7  ;;  %v1681_v10 = vld [vmem:[%s3210_s0] sm:$0xff]  ;;  %v3230_v11 = vmov 0   ;;  %vm66_vm1 = vcmask 261120   ;;  %v3246_v25 = vmov 1.0|1.0  }
  0x21   :  { %v1676_v8 = vshrl.u32 %v522_v3, 7  ;;  %v1553_v9 = vpack.c.bf16 %v58_v6, %v57_v2  ;;  %927 = vmatprep.mubr.bf16.mxu1 %v3230_v11  ;;  %v54_v22 = vld [vmem:[%s3211_s1] sm:$0xff]  ;;  %v3343_v26 = vmov 0  ;;  %v3345_v29 = vmov 0  ;;  %s1900_s1 = sld [smem:[#allocation3]]  ;;  %s1902_s23 = sld [smem:[#allocation3 + $0x1]] }
  0x22   :  { %1551 = vmatpush3.bf16.msra.mxu0 %v1550_v5  ;;  %v3347_v30 = vmov 0  ;;  %v3349_v33 = vmov 0  ;;  %v3351_v35 = vmov 0  ;;  %v3353_v37 = vmov 0  ;;  %s1925_s24 = sld [smem:[#allocation3 + $0x2]]  ;;  %s1927_s25 = sld [smem:[#allocation3 + $0x3]] }
  0x23   :  { %1552 = vmatprep.subr.bf16.mxu0 %v1608_v4  ;;  %v1685_v12 = vadd.s32 8, %v1676_v8  ;;  %v545_v13 = vsub.s32 1, %v1676_v8  ;;  %v553_v14 = vsub.s32 3, %v1676_v8  ;;  %v541_v15 = vsub.s32 0, %v1676_v8  ;;  %s1952_s26 = sld [smem:[#allocation3 + $0x4]]  ;;  %s1954_s27 = sld [smem:[#allocation3 + $0x5]] }
  0x24   :  { %v549_v16 = vsub.s32 2, %v1676_v8  ;;  %v1692_v17 = vadd.s32 16, %v1676_v8  ;;  %v1704_v21 = vadd.s32 24, %v1676_v8  ;;  %v1744_v27 = vadd.s32 32, %v1676_v8  ;;  %s1978_s28 = sld [smem:[#allocation3 + $0x6]]  ;;  %s2022_s29 = sld [smem:[#allocation3 + $0x7]] }
  0x25   :  { %v1695_v18 = vrot.slane %v1681_v10, %v545_v13  ;;  %v1698_v19 = vrot.slane %v1681_v10, %v553_v14  ;;  %v1701_v20 = vrot.slane %v1681_v10, %v541_v15  ;;  %v1747_v28 = vadd.s32 40, %v1676_v8  ;;  %s2045_s30 = sld [smem:[#allocation5]]  ;;  %s2070_s10 = sld [smem:[#allocation3 + $0x81]]  ;;  %v2098_v58 = vld [vmem:[%s3214_s4] sm:$0xff] }
  0x26   :  { %1554 = vmatpush3.bf16.msra.mxu0 %v1553_v9  ;;  %v1710_v23 = vrot.slane %v1681_v10, %v549_v16  ;;  %v1775_v31 = vadd.s32 48, %v1676_v8  ;;  %v1778_v32 = vadd.s32 56, %v1676_v8  ;;  %v1795_v34 = vadd.s32 64, %v1676_v8  ;;  %s2068_s9 = sld [smem:[#allocation3 + $0x80]]  ;;  %s2093_s11 = sld [smem:[#allocation3 + $0x82]] }
  0x27   :  { %vm572_vm2 = vcmp.eq.s32.totalorder %v1676_v8, %v1695_v18  ;;  %vm580_vm3 = vcmp.eq.s32.totalorder %v1685_v12, %v1695_v18  ;;  %vm574_vm4 = vcmp.eq.s32.totalorder %v1676_v8, %v1698_v19  ;;  %vm582_vm5 = vcmp.eq.s32.totalorder %v1685_v12, %v1698_v19  ;;  %s2119_s5 = sld [smem:[#allocation3 + $0x83]]  ;;  %s2121_s6 = sld [smem:[#allocation3 + $0x84]] }
  0x28   :  { %vm1720_vm6 = vmpackc.low %vm580_vm3, %vm572_vm2  ;;  %vm571_vm7 = vcmp.eq.s32.totalorder %v1676_v8, %v1701_v20  ;;  %vm579_vm8 = vcmp.eq.s32.totalorder %v1685_v12, %v1701_v20  ;;  %vm573_vm9 = vcmp.eq.s32.totalorder %v1676_v8, %v1710_v23  ;;  %vm581_vm10 = vcmp.eq.s32.totalorder %v1685_v12, %v1710_v23  ;;  %s2148_s14 = sld [smem:[#allocation3 + $0x85]]  ;;  %s2173_s15 = sld [smem:[#allocation3 + $0x86]] }
  0x29   :  { %1547 = vmatmul.mubr.msk.f32.vlgmr.msra.gmra.mrb[0].mxu0 %vm66_vm1, %v54_v22  ;;  %1278 = vmatprep.subr.msk.bf16.mxu1 %vm1720_vm6, %v3246_v25  ;;  %vm1735_vm11 = vmpackc.low %vm582_vm5, %vm574_vm4  ;;  %vm588_vm12 = vcmp.eq.s32.totalorder %v1692_v17, %v1695_v18  ;;  %vm596_vm13 = vcmp.eq.s32.totalorder %v1704_v21, %v1695_v18  ;;  %vm590_vm15 = vcmp.eq.s32.totalorder %v1692_v17, %v1698_v19  ;;  %v1811_v36 = vadd.s32 72, %v1676_v8  ;;  %s2175_s16 = sld [smem:[#allocation3 + $0x87]]  ;;  %s2223_s17 = sld [smem:[#allocation5 + $0x1]] }
  0x2a   :  { %v3344_v26 = vsel %vm1735_vm11, 4294967295, %v3343_v26  ;;  %1310 = vmatprep.subr.msk.bf16.mxu0 %vm1735_vm11, %v3246_v25  ;;  %vm1752_vm14 = vmpackc.low %vm579_vm8, %vm571_vm7  ;;  %vm598_vm0 = vcmp.eq.s32.totalorder %v1704_v21, %v1698_v19  ;;  %vm587_vm2 = vcmp.eq.s32.totalorder %v1692_v17, %v1701_v20  ;;  %vm595_vm3 = vcmp.eq.s32.totalorder %v1704_v21, %v1701_v20  ;;  %968 = vmatprep.mubr.bf16.mxu0 %v3230_v11  ;;  %s2242_s18 = sld [smem:[#allocation3 + $0x100]]  ;;  %s2261_s19 = sld [smem:[#allocation3 + $0x101]] }
  0x2b   :  { %v3346_v29 = vsel %vm1752_vm14, 4294967295, %v3345_v29  ;;  %1280 = vmatpush1.bf16.msk.msra.mxu1 %vm1752_vm14, %v3246_v25  ;;  %vm1766_vm1 = vmpackc.low %vm581_vm10, %vm573_vm9  ;;  %vm589_vm5 = vcmp.eq.s32.totalorder %v1692_v17, %v1710_v23  ;;  %vm597_vm7 = vcmp.eq.s32.totalorder %v1704_v21, %v1710_v23  ;;  %vm604_vm9 = vcmp.eq.s32.totalorder %v1744_v27, %v1695_v18  ;;  %3390 = sst [smem:[#allocation12_spill]] %s2045_s30  ;;  %s2263_s20 = sld [smem:[#allocation3 + $0x102]] }
  0x2c   :  { %v3348_v30 = vsel %vm1766_vm1, 4294967295, %v3347_v30  ;;  %1312 = vmatpush1.bf16.msk.msra.mxu0 %vm1766_vm1, %v3246_v25  ;;  %vm1786_vm4 = vmpackc.low %vm596_vm13, %vm588_vm12  ;;  %v3355_v38 = vmov 0  ;;  %v3358_v39 = vmov 0  ;;  %v3361_v40 = vmov 0  ;;  %s2299_s21 = sld [smem:[#allocation3 + $0x103]]  ;;  %s2301_s22 = sld [smem:[#allocation3 + $0x104]] }
  0x2d   :  { %v3350_v33 = vsel %vm1786_vm4, 4294967295, %v3349_v33  ;;  %1282 = vmatprep.subr.msk.bf16.mxu1 %vm1786_vm4, %v3246_v25  ;;  %vm1800_vm8 = vmpackc.low %vm598_vm0, %vm590_vm15  ;;  %vm614_vm15 = vcmp.eq.s32.totalorder %v1747_v28, %v1698_v19  ;;  %v1894_v41 = vadd.s32 80, %v1676_v8  ;;  %v1897_v42 = vadd.s32 88, %v1676_v8  ;;  %s2319_s0 = sld [smem:[#allocation3 + $0x105]]  ;;  %s2343_s2 = sld [smem:[#allocation3 + $0x106]] }
  0x2e   :  { %v3352_v35 = vsel %vm1800_vm8, 4294967295, %v3351_v35  ;;  %1314 = vmatprep.subr.msk.bf16.mxu0 %vm1800_vm8, %v3246_v25  ;;  %vm1822_vm13 = vmpackc.low %vm595_vm3, %vm587_vm2  ;;  %v3365_v43 = vmov 0  ;;  %v3369_v44 = vmov 0  ;;  %v1947_v45 = vadd.s32 96, %v1676_v8  ;;  %3416 = sst [smem:[#allocation18_spill]] %s2173_s15  ;;  %s2345_s12 = sld [smem:[#allocation3 + $0x107]] }
  0x2f   :  { %v3354_v37 = vsel %vm1822_vm13, 4294967295, %v3353_v37  ;;  %1284 = vmatpush1.bf16.msk.msra.mxu1 %vm1822_vm13, %v3246_v25  ;;  %vm1843_vm2 = vmpackc.low %vm597_vm7, %vm589_vm5  ;;  %vm3357_vm5 = vcmp.eq.s32.totalorder %v1747_v28, %v1695_v18  ;;  %v1950_v46 = vadd.s32 104, %v1676_v8  ;;  %v3373_v47 = vmov 0  ;;  %3417 = sst [smem:[#allocation19_spill]] %s2175_s16  ;;  %s2401_s8 = sld [smem:[#allocation3 + $0x180]] }
  0x30   :  { %v3356_v38 = vsel %vm1843_vm2, 4294967295, %v3355_v38  ;;  %1316 = vmatpush1.bf16.msk.msra.mxu0 %vm1843_vm2, %v3246_v25  ;;  %vm1864_vm7 = vmpackc.low %vm3357_vm5, %vm604_vm9  ;;  %vm3360_vm9 = vcmp.eq.s32.totalorder %v1744_v27, %v1698_v19  ;;  %v1972_v48 = vadd.s32 112, %v1676_v8  ;;  %v1975_v49 = vadd.s32 120, %v1676_v8  ;;  %3428 = sst [smem:[#allocation22_spill]] %s2223_s17  ;;  %s2385_s13 = sld [smem:[#allocation5 + $0x2]] }
  0x31   :  { %v3359_v39 = vsel %vm1864_vm7, 4294967295, %v3358_v39  ;;  %1286 = vmatprep.subr.msk.bf16.mxu1 %vm1864_vm7, %v3246_v25  ;;  %vm1885_vm5 = vmpackc.low %vm614_vm15, %vm3360_vm9  ;;  %vm3363_vm15 = vcmp.eq.s32.totalorder %v1744_v27, %v1701_v20  ;;  %vm3364_vm9 = vcmp.eq.s32.totalorder %v1747_v28, %v1701_v20  ;;  %v561_v50 = vsub.s32 5, %v1676_v8  ;;  %3434 = sst [smem:[#allocation24_spill]] %s2242_s18  ;;  %s2416_s7 = sld [smem:[#allocation3 + $0x181]] }
  0x32   :  { %v3362_v40 = vsel %vm1885_vm5, 4294967295, %v3361_v40  ;;  %1318 = vmatprep.subr.msk.bf16.mxu0 %vm1885_vm5, %v3246_v25  ;;  %vm1913_vm3 = vmpackc.low %vm3364_vm9, %vm3363_vm15  ;;  %vm3367_vm15 = vcmp.eq.s32.totalorder %v1744_v27, %v1710_v23  ;;  %vm3368_vm9 = vcmp.eq.s32.totalorder %v1747_v28, %v1710_v23  ;;  %v3377_v51 = vmov 0  ;;  %3440 = sst [smem:[#allocation26_spill]] %s2261_s19  ;;  %s2418_s3 = sld [smem:[#allocation3 + $0x182]] }
  0x33   :  { %v3366_v43 = vsel %vm1913_vm3, 4294967295, %v3365_v43  ;;  %1288 = vmatpush1.bf16.msk.msra.mxu1 %vm1913_vm3, %v3246_v25  ;;  %vm1938_vm0 = vmpackc.low %vm3368_vm9, %vm3367_vm15  ;;  %vm3371_vm15 = vcmp.eq.s32.totalorder %v1775_v31, %v1695_v18  ;;  %vm3372_vm9 = vcmp.eq.s32.totalorder %v1778_v32, %v1695_v18  ;;  %v3382_v52 = vmov 0  ;;  %3441 = sst [smem:[#allocation27_spill]] %s2263_s20 }
  0x34   :  { %v3370_v44 = vsel %vm1938_vm0, 4294967295, %v3369_v44  ;;  %1320 = vmatpush1.bf16.msk.msra.mxu0 %vm1938_vm0, %v3246_v25  ;;  %vm1965_vm12 = vmpackc.low %vm3372_vm9, %vm3371_vm15  ;;  %vm3375_vm15 = vcmp.eq.s32.totalorder %v1775_v31, %v1698_v19  ;;  %vm3376_vm9 = vcmp.eq.s32.totalorder %v1778_v32, %v1698_v19  ;;  %v3387_v53 = vmov 0 }
  0x35   :  { %v3374_v47 = vsel %vm1965_vm12, 4294967295, %v3373_v47  ;;  %1290 = vmatprep.subr.msk.bf16.mxu1 %vm1965_vm12, %v3246_v25  ;;  %vm1989_vm5 = vmpackc.low %vm3376_vm9, %vm3375_vm15  ;;  %vm3380_vm15 = vcmp.eq.s32.totalorder %v1775_v31, %v1701_v20  ;;  %vm3381_vm9 = vcmp.eq.s32.totalorder %v1778_v32, %v1701_v20  ;;  %v3393_v54 = vmov 0 }
  0x36   :  { %v3378_v51 = vsel %vm1989_vm5, 4294967295, %v3377_v51  ;;  %1322 = vmatprep.subr.msk.bf16.mxu0 %vm1989_vm5, %v3246_v25  ;;  %vm2010_vm10 = vmpackc.low %vm3381_vm9, %vm3380_vm15  ;;  %vm3385_vm15 = vcmp.eq.s32.totalorder %v1775_v31, %v1710_v23  ;;  %vm3386_vm9 = vcmp.eq.s32.totalorder %v1778_v32, %v1710_v23  ;;  %v3398_v55 = vmov 0 }
  0x37   :  { %3379 = vst [vmem:[#allocation9_spill] sm:$0xff] %v3378_v51  ;;  %v3383_v52 = vsel %vm2010_vm10, 4294967295, %v3382_v52  ;;  %1292 = vmatpush1.bf16.msk.msra.mxu1 %vm2010_vm10, %v3246_v25  ;;  %vm2033_vm3 = vmpackc.low %vm3386_vm9, %vm3385_vm15  ;;  %vm3391_vm15 = vcmp.eq.s32.totalorder %v1795_v34, %v1695_v18  ;;  %vm3392_vm9 = vcmp.eq.s32.totalorder %v1811_v36, %v1695_v18  ;;  %v2090_v56 = vrot.slane %v1681_v10, %v561_v50 }
  0x38   :  { %3384 = vst [vmem:[#allocation10_spill] sm:$0xff] %v3383_v52  ;;  %v3388_v53 = vsel %vm2033_vm3, 4294967295, %v3387_v53  ;;  %1324 = vmatpush1.bf16.msk.msra.mxu0 %vm2033_vm3, %v3246_v25  ;;  %vm2056_vm5 = vmpackc.low %vm3392_vm9, %vm3391_vm15  ;;  %vm3396_vm15 = vcmp.eq.s32.totalorder %v1795_v34, %v1698_v19  ;;  %vm3397_vm9 = vcmp.eq.s32.totalorder %v1811_v36, %v1698_v19  ;;  %v569_v57 = vsub.s32 7, %v1676_v8 }
  0x39   :  { %3389 = vst [vmem:[#allocation11_spill] sm:$0xff] %v3388_v53  ;;  %v3394_v54 = vsel %vm2056_vm5, 4294967295, %v3393_v54  ;;  %1294 = vmatprep.subr.msk.bf16.mxu1 %vm2056_vm5, %v3246_v25  ;;  %vm2081_vm12 = vmpackc.low %vm3397_vm9, %vm3396_vm15  ;;  %v3240_v59 = vstv %s1900_s1  ;;  %v3238_v60 = vstv %s1902_s23  ;;  %vm3401_vm15 = vcmp.eq.s32.totalorder %v1795_v34, %v1701_v20 }
  0x3a   :  { %3395 = vst [vmem:[#allocation13_spill] sm:$0xff] %v3394_v54  ;;  %v3399_v55 = vsel %vm2081_vm12, 4294967295, %v3398_v55  ;;  %1326 = vmatprep.subr.msk.bf16.mxu0 %vm2081_vm12, %v3246_v25  ;;  %vm3402_vm9 = vcmp.eq.s32.totalorder %v1811_v36, %v1701_v20  ;;  %v3403_v61 = vmov 0  ;;  %v183_v62 = vmul.f32 %v3238_v60, %v2098_v58 }
  0x3b   :  { %3400 = vst [vmem:[#allocation14_spill] sm:$0xff] %v3399_v55  ;;  %vm2111_vm0 = vmpackc.low %vm3402_vm9, %vm3401_vm15  ;;  %v3236_v63 = vstv %s1925_s24  ;;  %v3235_v0 = vstv %s1927_s25  ;;  %vm3406_vm15 = vcmp.eq.s32.totalorder %v1795_v34, %v1710_v23  ;;  %vm3407_vm9 = vcmp.eq.s32.totalorder %v1811_v36, %v1710_v23 }
  0x3c   :  { %v3404_v61 = vsel %vm2111_vm0, 4294967295, %v3403_v61  ;;  %1296 = vmatpush1.bf16.msk.msra.mxu1 %vm2111_vm0, %v3246_v25  ;;  %vm2137_vm10 = vmpackc.low %vm3407_vm9, %vm3406_vm15  ;;  %v3408_v1 = vmov 0  ;;  %v2146_v2 = vrot.slane %v1681_v10, %v569_v57  ;;  %v181_v3 = vmul.f32 %v3240_v59, %v2098_v58 }
  0x3d   :  { %3405 = vst [vmem:[#allocation15_spill] sm:$0xff] %v3404_v61  ;;  %v3409_v1 = vsel %vm2137_vm10, 4294967295, %v3408_v1  ;;  %v185_v4 = vmul.f32 %v3236_v63, %v2098_v58  ;;  %1328 = vmatpush1.bf16.msk.msra.mxu0 %vm2137_vm10, %v3246_v25  ;;  %vm3411_vm15 = vcmp.eq.s32.totalorder %v1894_v41, %v1695_v18  ;;  %vm3412_vm9 = vcmp.eq.s32.totalorder %v1897_v42, %v1695_v18 }
  0x3e   :  { %3410 = vst [vmem:[#allocation16_spill] sm:$0xff] %v3409_v1  ;;  %vm2165_vm12 = vmpackc.low %vm3412_vm9, %vm3411_vm15  ;;  %v3413_v5 = vmov 0  ;;  %v187_v6 = vmul.f32 %v3235_v0, %v2098_v58  ;;  %v3233_v7 = vstv %s1952_s26  ;;  %v3232_v9 = vstv %s1954_s27  ;;  %v3611_v24 = vld [vmem:[#allocation9_spill] sm:$0xff] }
  0x3f   :  { %v3414_v5 = vsel %vm2165_vm12, 4294967295, %v3413_v5  ;;  %v3234_v13 = vstv %s1978_s28  ;;  %1298 = vmatprep.subr.msk.bf16.mxu1 %vm2165_vm12, %v3246_v25  ;;  %vm3418_vm15 = vcmp.eq.s32.totalorder %v1894_v41, %v1698_v19  ;;  %vm3419_vm9 = vcmp.eq.s32.totalorder %v1897_v42, %v1698_v19 }
  0x40   :  { %3415 = vst [vmem:[#allocation17_spill] sm:$0xff] %v3414_v5  ;;  %vm2192_vm0 = vmpackc.low %vm3419_vm9, %vm3418_vm15  ;;  %v3420_v14 = vmov 0  ;;  %v189_v15 = vmul.f32 %v3233_v7, %v2098_v58  ;;  %v191_v16 = vmul.f32 %v3232_v9, %v2098_v58  ;;  %vm3423_vm15 = vcmp.eq.s32.totalorder %v1894_v41, %v1701_v20 }
  0x41   :  { %v3421_v14 = vsel %vm2192_vm0, 4294967295, %v3420_v14  ;;  %1330 = vmatprep.subr.msk.bf16.mxu0 %vm2192_vm0, %v3246_v25  ;;  %vm3424_vm9 = vcmp.eq.s32.totalorder %v1897_v42, %v1701_v20  ;;  %v3425_v22 = vmov 0  ;;  %v193_v50 = vmul.f32 %v3234_v13, %v2098_v58 }
  0x42   :  { %3422 = vst [vmem:[#allocation20_spill] sm:$0xff] %v3421_v14  ;;  %vm2215_vm3 = vmpackc.low %vm3424_vm9, %vm3423_vm15  ;;  %v3237_v57 = vstv %s2022_s29  ;;  %v197_v11 = vrot.slane %v183_v62, 1  ;;  %v201_v9 = vrot.slane %v185_v4, 2  ;;  %vm3429_vm15 = vcmp.eq.s32.totalorder %v1894_v41, %v1710_v23 }
  0x43   :  { %v3426_v22 = vsel %vm2215_vm3, 4294967295, %v3425_v22  ;;  %1300 = vmatpush1.bf16.msk.msra.mxu1 %vm2215_vm3, %v3246_v25  ;;  %vm3430_vm9 = vcmp.eq.s32.totalorder %v1897_v42, %v1710_v23  ;;  %v3431_v7 = vmov 0  ;;  %v195_v62 = vmul.f32 %v3237_v57, %v2098_v58 }
  0x44   :  { %3427 = vst [vmem:[#allocation21_spill] sm:$0xff] %v3426_v22  ;;  %vm2238_vm12 = vmpackc.low %vm3430_vm9, %vm3429_vm15  ;;  %v205_v4 = vrot.slane %v187_v6, 3  ;;  %v209_v13 = vrot.slane %v191_v16, 1  ;;  %vm3435_vm15 = vcmp.eq.s32.totalorder %v1947_v45, %v1695_v18  ;;  %vm3436_vm9 = vcmp.eq.s32.totalorder %v1950_v46, %v1695_v18 }
  0x45   :  { %v3432_v7 = vsel %vm2238_vm12, 4294967295, %v3431_v7  ;;  %1332 = vmatpush1.bf16.msk.msra.mxu0 %vm2238_vm12, %v3246_v25  ;;  %vm2257_vm10 = vmpackc.low %vm3436_vm9, %vm3435_vm15  ;;  %v3437_v63 = vmov 0  ;;  %v199_v6 = vadd.f32 %v197_v11, %v181_v3  ;;  %v213_v16 = vrot.slane %v193_v50, 2 }
  0x46   :  { %3433 = vst [vmem:[#allocation23_spill] sm:$0xff] %v3432_v7  ;;  %v3438_v63 = vsel %vm2257_vm10, 4294967295, %v3437_v63  ;;  %v3243_v57 = vstv %s2068_s9  ;;  %v3242_v60 = vstv %s2070_s10  ;;  %1302 = vmatprep.subr.msk.bf16.mxu1 %vm2257_vm10, %v3246_v25  ;;  %vm3442_vm15 = vcmp.eq.s32.totalorder %v1947_v45, %v1698_v19 }
  0x47   :  { %3439 = vst [vmem:[#allocation25_spill] sm:$0xff] %v3438_v63  ;;  %vm3443_vm9 = vcmp.eq.s32.totalorder %v1950_v46, %v1698_v19  ;;  %v3444_v59 = vmov 0  ;;  %v211_v11 = vadd.f32 %v209_v13, %v189_v15  ;;  %v217_v3 = vrot.slane %v195_v62, 3 }
  0x48   :  { %vm2276_vm12 = vmpackc.low %vm3443_vm9, %vm3442_vm15  ;;  %v228_v50 = vmul.f32 %v3243_v57, %v2098_v58  ;;  %v230_v0 = vmul.f32 %v3242_v60, %v2098_v58  ;;  %vm3447_vm15 = vcmp.eq.s32.totalorder %v1947_v45, %v1701_v20  ;;  %vm3448_vm9 = vcmp.eq.s32.totalorder %v1950_v46, %v1701_v20 }
  0x49   :  { %v3445_v59 = vsel %vm2276_vm12, 4294967295, %v3444_v59  ;;  %1334 = vmatprep.subr.msk.bf16.mxu0 %vm2276_vm12, %v3246_v25  ;;  %vm2295_vm10 = vmpackc.low %vm3448_vm9, %vm3447_vm15  ;;  %v3449_v13 = vmov 0  ;;  %v203_v15 = vadd.f32 %v201_v9, %v199_v6  ;;  %v3253_v62 = vstv %s2093_s11 }
  0x4a   :  { %3446 = vst [vmem:[#allocation28_spill] sm:$0xff] %v3445_v59  ;;  %v3450_v13 = vsel %vm2295_vm10, 4294967295, %v3449_v13  ;;  %v3252_v60 = vstv %s2119_s5  ;;  %v3251_v57 = vstv %s2121_s6  ;;  %1304 = vmatpush1.bf16.msk.msra.mxu1 %vm2295_vm10, %v3246_v25  ;;  %vm3452_vm15 = vcmp.eq.s32.totalorder %v1947_v45, %v1710_v23 }
  0x4b   :  { %3451 = vst [vmem:[#allocation29_spill] sm:$0xff] %v3450_v13  ;;  %vm3453_vm9 = vcmp.eq.s32.totalorder %v1950_v46, %v1710_v23  ;;  %v3454_v59 = vmov 0  ;;  %v215_v9 = vadd.f32 %v213_v16, %v211_v11  ;;  %v232_v6 = vmul.f32 %v3253_v62, %v2098_v58 }
  0x4c   :  { %vm2315_vm12 = vmpackc.low %vm3453_vm9, %vm3452_vm15  ;;  %v234_v25 = vmul.f32 %v3252_v60, %v2098_v58  ;;  %v236_v13 = vmul.f32 %v3251_v57, %v2098_v58  ;;  %v3457_v63 = vmov 1.0|1.0   ;;  %vm3458_vm15 = vcmp.eq.s32.totalorder %v1972_v48, %v1695_v18 }
  0x4d   :  { %v3455_v59 = vsel %vm2315_vm12, 4294967295, %v3454_v59  ;;  %1336 = vmatpush1.bf16.msk.msra.mxu0 %vm2315_vm12, %v3457_v63  ;;  %vm3459_vm9 = vcmp.eq.s32.totalorder %v1975_v49, %v1695_v18  ;;  %v3460_v16 = vmov 0  ;;  %v207_v11 = vadd.f32 %v205_v4, %v203_v15 }
  0x4e   :  { %3456 = vst [vmem:[#allocation30_spill] sm:$0xff] %v3455_v59  ;;  %vm2339_vm10 = vmpackc.low %vm3459_vm9, %vm3458_vm15  ;;  %v3262_v57 = vstv %s2148_s14  ;;  %v3259_v60 = vstv %s2173_s15  ;;  %v3258_v62 = vstv %s2175_s16  ;;  %vm3463_vm12 = vcmp.eq.s32.totalorder %v1972_v48, %v1698_v19  ;;  %s2445_s16 = sld [smem:[#allocation3 + $0x183]]  ;;  %s2447_s15 = sld [smem:[#allocation3 + $0x184]] }
  0x4f   :  { %v3461_v16 = vsel %vm2339_vm10, 4294967295, %v3460_v16  ;;  %1306 = vmatprep.subr.msk.bf16.mxu1 %vm2339_vm10, %v3457_v63  ;;  %vm3464_vm15 = vcmp.eq.s32.totalorder %v1975_v49, %v1698_v19  ;;  %v3465_v18 = vmov 0  ;;  %v219_v59 = vadd.f32 %v217_v3, %v215_v9 }
  0x50   :  { %3462 = vst [vmem:[#allocation31_spill] sm:$0xff] %v3461_v16  ;;  %vm2359_vm9 = vmpackc.low %vm3464_vm15, %vm3463_vm12  ;;  %v238_v4 = vmul.f32 %v3262_v57, %v2098_v58  ;;  %v240_v15 = vmul.f32 %v3259_v60, %v2098_v58  ;;  %v242_v16 = vmul.f32 %v3258_v62, %v2098_v58  ;;  %vm3468_vm12 = vcmp.eq.s32.totalorder %v1972_v48, %v1701_v20 }
  0x51   :  { %v3466_v18 = vsel %vm2359_vm9, 4294967295, %v3465_v18  ;;  %1338 = vmatprep.subr.msk.bf16.mxu0 %vm2359_vm9, %v3457_v63  ;;  %vm3469_vm15 = vcmp.eq.s32.totalorder %v1975_v49, %v1701_v20  ;;  %v3470_v19 = vmov 0  ;;  %v244_v3 = vrot.slane %v230_v0, 1 }
  0x52   :  { %3467 = vst [vmem:[#allocation32_spill] sm:$0xff] %v3466_v18  ;;  %vm2381_vm10 = vmpackc.low %vm3469_vm15, %vm3468_vm12  ;;  %v248_v9 = vrot.slane %v232_v6, 2  ;;  %v252_v62 = vrot.slane %v234_v25, 3  ;;  %vm3473_vm9 = vcmp.eq.s32.totalorder %v1972_v48, %v1710_v23  ;;  %vm3474_vm12 = vcmp.eq.s32.totalorder %v1975_v49, %v1710_v23 }
  0x53   :  { %v3471_v19 = vsel %vm2381_vm10, 4294967295, %v3470_v19  ;;  %1308 = vmatpush1.bf16.msk.msra.mxu1 %vm2381_vm10, %v3457_v63  ;;  %vm2397_vm15 = vmpackc.low %vm3474_vm12, %vm3473_vm9  ;;  %v3475_v20 = vmov 0  ;;  %v221_v0 = vrot.slane %v219_v59, 4  ;;  %v256_v25 = vrot.slane %v238_v4, 1 }
  0x54   :  { %3472 = vst [vmem:[#allocation33_spill] sm:$0xff] %v3471_v19  ;;  %v3476_v20 = vsel %vm2397_vm15, 4294967295, %v3475_v20  ;;  %v260_v6 = vrot.slane %v240_v15, 2  ;;  %v264_v57 = vrot.slane %v242_v16, 3  ;;  %1340 = vmatpush1.bf16.msk.msra.mxu0 %vm2397_vm15, %v3457_v63  ;;  %vm3478_vm10 = vcmp.eq.s32.totalorder %v1676_v8, %v2090_v56  ;;  %3488 = sst [smem:[#allocation37_spill]] %s2447_s15 }
  0x55   :  { %3477 = vst [vmem:[#allocation34_spill] sm:$0xff] %v3476_v20  ;;  %vm3479_vm9 = vcmp.eq.s32.totalorder %v1685_v12, %v2090_v56  ;;  %v3480_v23 = vmov 0  ;;  %v246_v59 = vadd.f32 %v244_v3, %v228_v50  ;;  %v3271_v16 = vstv %s2242_s18  ;;  %s2464_s18 = sld [smem:[#allocation3 + $0x186]] }
  0x56   :  { %vm2412_vm12 = vmpackc.low %vm3479_vm9, %vm3478_vm10  ;;  %v3270_v4 = vstv %s2261_s19  ;;  %vm3483_vm10 = vcmp.eq.s32.totalorder %v1676_v8, %v2146_v2  ;;  %vm3484_vm9 = vcmp.eq.s32.totalorder %v1685_v12, %v2146_v2  ;;  %v3485_v60 = vmov 0  ;;  %s2454_s19 = sld [smem:[#allocation3 + $0x185]] }
  0x57   :  { %v3481_v23 = vsel %vm2412_vm12, 4294967295, %v3480_v23  ;;  %1342 = vmatprep.subr.msk.bf16.mxu1 %vm2412_vm12, %v3457_v63  ;;  %vm2432_vm15 = vmpackc.low %vm3484_vm9, %vm3483_vm10  ;;  %v223_v50 = vadd.f32 %v221_v0, %v207_v11  ;;  %v258_v3 = vadd.f32 %v256_v25, %v236_v13  ;;  %v275_v15 = vmul.f32 %v3271_v16, %v2098_v58 }
  0x58   :  { %3482 = vst [vmem:[#allocation35_spill] sm:$0xff] %v3481_v23  ;;  %v3486_v60 = vsel %vm2432_vm15, 4294967295, %v3485_v60  ;;  %v277_v23 = vmul.f32 %v3270_v4, %v2098_v58  ;;  %1374 = vmatprep.subr.msk.bf16.mxu0 %vm2432_vm15, %v3457_v63  ;;  %v250_v20 = vadd.f32 %v248_v9, %v246_v59  ;;  %v3489_v13 = vstv %s2263_s20  ;;  %s2466_s20 = sld [smem:[#allocation3 + $0x187]] }
  0x59   :  { %3487 = vst [vmem:[#allocation36_spill] sm:$0xff] %v3486_v60  ;;  %v279_v11 = vmul.f32 %v3489_v13, %v2098_v58  ;;  %v3282_v0 = vstv %s2299_s21  ;;  %v3280_v25 = vstv %s2301_s22  ;;  %v3490_v4 = vstv %s2045_s30  ;;  %s2480_s30 = sld [smem:[#allocation5 + $0x3]] }
  0x5a   :  { %v225_v16 = vadd.f32 %v3490_v4, %v223_v50  ;;  %v262_v60 = vadd.f32 %v260_v6, %v258_v3  ;;  %v281_v19 = vmul.f32 %v3282_v0, %v2098_v58  ;;  %v283_v18 = vmul.f32 %v3280_v25, %v2098_v58 }
  0x5b   :  { %v254_v9 = vadd.f32 %v252_v62, %v250_v20  ;;  %v3279_v59 = vstv %s2319_s0  ;;  %v3281_v13 = vstv %s2343_s2  ;;  %v3283_v7 = vstv %s2345_s12 }
  0x5c   :  { %226 = vst [vmem:[#allocation2] sm:$0x1] %v225_v16  ;;  %v266_v4 = vadd.f32 %v264_v57, %v262_v60  ;;  %v285_v6 = vmul.f32 %v3279_v59, %v2098_v58  ;;  %v287_v50 = vmul.f32 %v3281_v13, %v2098_v58  ;;  %v289_v3 = vmul.f32 %v3283_v7, %v2098_v58 }
  0x5d   :  { %v291_v62 = vrot.slane %v277_v23, 1  ;;  %v295_v20 = vrot.slane %v279_v11, 2  ;;  %v299_v16 = vrot.slane %v281_v19, 3  ;;  %v3287_v7 = vstv %s2401_s8 }
  0x5e   :  { %v268_v57 = vrot.slane %v266_v4, 4  ;;  %v303_v59 = vrot.slane %v285_v6, 1  ;;  %v307_v25 = vrot.slane %v287_v50, 2  ;;  %v311_v13 = vrot.slane %v289_v3, 3 }
  0x5f   :  { %v293_v0 = vadd.f32 %v291_v62, %v275_v15  ;;  %v3286_v22 = vstv %s2416_s7  ;;  %v3295_v14 = vstv %s2418_s3  ;;  %v322_v19 = vmul.f32 %v3287_v7, %v2098_v58 }
  0x60   :  { %v270_v23 = vadd.f32 %v268_v57, %v254_v9  ;;  %v305_v11 = vadd.f32 %v303_v59, %v283_v18  ;;  %v324_v4 = vmul.f32 %v3286_v22, %v2098_v58  ;;  %v326_v15 = vmul.f32 %v3295_v14, %v2098_v58 }
  0x61   :  { %v297_v6 = vadd.f32 %v295_v20, %v293_v0  ;;  %v3294_v50 = vstv %s2445_s16  ;;  %v3288_v3 = vstv %s2447_s15  ;;  %v3491_v62 = vstv %s2223_s17 }
  0x62   :  { %v272_v60 = vadd.f32 %v3491_v62, %v270_v23  ;;  %v309_v9 = vadd.f32 %v307_v25, %v305_v11  ;;  %v328_v18 = vmul.f32 %v3294_v50, %v2098_v58  ;;  %v330_v59 = vmul.f32 %v3288_v3, %v2098_v58 }
  0x63   :  { %v301_v57 = vadd.f32 %v299_v16, %v297_v6  ;;  %v3292_v22 = vstv %s2454_s19  ;;  %v3291_v7 = vstv %s2464_s18  ;;  %v3293_v0 = vstv %s2466_s20 }
  0x64   :  { %273 = vst [vmem:[#allocation2 + $0x1] sm:$0x1] %v272_v60  ;;  %v313_v20 = vadd.f32 %v311_v13, %v309_v9  ;;  %v332_v23 = vmul.f32 %v3292_v22, %v2098_v58  ;;  %v334_v25 = vmul.f32 %v3291_v7, %v2098_v58  ;;  %v336_v11 = vmul.f32 %v3293_v0, %v2098_v58  ;;  %v2521_v13 = vld [vmem:[%s3214_s4 + $0x8] sm:$0xff]  ;;  %s3501_s4 = sld [smem:[#allocation18_spill]] }
  0x65   :  { %v338_v62 = vrot.slane %v324_v4, 1  ;;  %v342_v16 = vrot.slane %v326_v15, 2  ;;  %v346_v6 = vrot.slane %v328_v18, 3  ;;  %v3492_v4 = vstv %s1900_s1  ;;  %s3502_s1 = sld [smem:[#allocation19_spill]] }
  0x66   :  { %v315_v60 = vrot.slane %v313_v20, 4  ;;  %v350_v9 = vrot.slane %v332_v23, 1  ;;  %v354_v7 = vrot.slane %v334_v25, 2  ;;  %v358_v22 = vrot.slane %v336_v11, 3 }
  0x67   :  { %v340_v58 = vadd.f32 %v338_v62, %v322_v19  ;;  %v368_v0 = vmul.f32 %v3492_v4, %v2521_v13  ;;  %v3493_v15 = vstv %s1902_s23  ;;  %v3494_v50 = vstv %s1925_s24  ;;  %s3509_s23 = sld [smem:[#allocation24_spill]]  ;;  %s3510_s24 = sld [smem:[#allocation26_spill]] }
  0x68   :  { %v369_v18 = vmul.f32 %v3493_v15, %v2521_v13  ;;  %v370_v14 = vmul.f32 %v3494_v50, %v2521_v13  ;;  %v317_v3 = vadd.f32 %v315_v60, %v301_v57  ;;  %v352_v5 = vadd.f32 %v350_v9, %v330_v59 }
  0x69   :  { %v3495_v1 = vstv %s1927_s25  ;;  %v3496_v20 = vstv %s1952_s26  ;;  %v344_v25 = vadd.f32 %v342_v16, %v340_v58  ;;  %v3497_v19 = vstv %s1954_s27  ;;  %s3513_s25 = sld [smem:[#allocation27_spill]]  ;;  %s3517_s26 = sld [smem:[#allocation12_spill]] }
  0x6a   :  { %v371_v61 = vmul.f32 %v3495_v1, %v2521_v13  ;;  %v372_v23 = vmul.f32 %v3496_v20, %v2521_v13  ;;  %v373_v11 = vmul.f32 %v3497_v19, %v2521_v13  ;;  %v3498_v62 = vstv %s1978_s28  ;;  %s3524_s27 = sld [smem:[#allocation37_spill]]  ;;  %s3528_s28 = sld [smem:[#allocation22_spill]] }
  0x6b   :  { %v374_v4 = vmul.f32 %v3498_v62, %v2521_v13  ;;  %v3499_v15 = vstv %s2022_s29  ;;  %v3500_v57 = vstv %s2385_s13  ;;  %v356_v1 = vadd.f32 %v354_v7, %v352_v5 }
  0x6c   :  { %v375_v50 = vmul.f32 %v3499_v15, %v2521_v13  ;;  %v319_v59 = vadd.f32 %v3500_v57, %v317_v3  ;;  %v377_v60 = vrot.slane %v369_v18, 1  ;;  %v381_v9 = vrot.slane %v370_v14, 2 }
  0x6d   :  { %v348_v16 = vadd.f32 %v346_v6, %v344_v25  ;;  %v385_v58 = vrot.slane %v371_v61, 3  ;;  %v389_v20 = vrot.slane %v373_v11, 1  ;;  %v393_v19 = vrot.slane %v374_v4, 2 }
  0x6e   :  { %320 = vst [vmem:[#allocation2 + $0x2] sm:$0x1] %v319_v59  ;;  %v360_v62 = vadd.f32 %v358_v22, %v356_v1  ;;  %v379_v55 = vadd.f32 %v377_v60, %v368_v0  ;;  %v397_v54 = vrot.slane %v375_v50, 3  ;;  %v3503_v15 = vstv %s2068_s9  ;;  %s3675_s9 = sld [smem:[#allocation39_spill]] }
  0x6f   :  { %v406_v53 = vmul.f32 %v3503_v15, %v2521_v13  ;;  %v391_v3 = vadd.f32 %v389_v20, %v372_v23  ;;  %v3504_v5 = vstv %s2070_s10  ;;  %v3505_v14 = vstv %s2093_s11 }
  0x70   :  { %v407_v7 = vmul.f32 %v3504_v5, %v2521_v13  ;;  %v408_v6 = vmul.f32 %v3505_v14, %v2521_v13  ;;  %v3506_v61 = vstv %s2119_s5  ;;  %v362_v25 = vrot.slane %v360_v62, 4  ;;  %s3676_s5 = sld [smem:[#allocation40_spill]] }
  0x71   :  { %v409_v18 = vmul.f32 %v3506_v61, %v2521_v13  ;;  %v383_v11 = vadd.f32 %v381_v9, %v379_v55  ;;  %v3507_v22 = vstv %s2121_s6  ;;  %v3508_v4 = vstv %s2148_s14 }
  0x72   :  { %v410_v0 = vmul.f32 %v3507_v22, %v2521_v13  ;;  %v411_v50 = vmul.f32 %v3508_v4, %v2521_v13  ;;  %v395_v23 = vadd.f32 %v393_v19, %v391_v3  ;;  %v3511_v57 = vstv %s3501_s4 }
  0x73   :  { %v412_v59 = vmul.f32 %v3511_v57, %v2521_v13  ;;  %v3512_v1 = vstv %s3502_s1  ;;  %v415_v20 = vrot.slane %v407_v7, 1  ;;  %v364_v62 = vadd.f32 %v362_v25, %v348_v16 }
  0x74   :  { %v413_v60 = vmul.f32 %v3512_v1, %v2521_v13  ;;  %v387_v15 = vadd.f32 %v385_v58, %v383_v11  ;;  %v419_v55 = vrot.slane %v408_v6, 2  ;;  %v423_v9 = vrot.slane %v409_v18, 3 }
  0x75   :  { %v399_v5 = vadd.f32 %v397_v54, %v395_v23  ;;  %v417_v14 = vadd.f32 %v415_v20, %v406_v53  ;;  %v427_v61 = vrot.slane %v411_v50, 1  ;;  %v431_v19 = vrot.slane %v412_v59, 2 }
  0x76   :  { %v3514_v3 = vstv %s2480_s30  ;;  %v435_v4 = vrot.slane %v413_v60, 3  ;;  %v3515_v57 = vstv %s3509_s23  ;;  %v3516_v16 = vstv %s3510_s24 }
  0x77   :  { %v366_v22 = vadd.f32 %v3514_v3, %v364_v62  ;;  %v444_v7 = vmul.f32 %v3515_v57, %v2521_v13  ;;  %v445_v58 = vmul.f32 %v3516_v16, %v2521_v13  ;;  %v401_v25 = vrot.slane %v399_v5, 4 }
  0x78   :  { %v421_v6 = vadd.f32 %v419_v55, %v417_v14  ;;  %v429_v18 = vadd.f32 %v427_v61, %v410_v0  ;;  %v3518_v54 = vstv %s3513_s25  ;;  %v3519_v53 = vstv %s2299_s21 }
  0x79   :  { %v446_v11 = vmul.f32 %v3518_v54, %v2521_v13  ;;  %367 = vst [vmem:[#allocation2 + $0x3] sm:$0x1] %v366_v22  ;;  %v447_v50 = vmul.f32 %v3519_v53, %v2521_v13  ;;  %v3520_v23 = vstv %s2301_s22  ;;  %v3521_v1 = vstv %s2319_s0 }
  0x7a   :  { %v448_v59 = vmul.f32 %v3520_v23, %v2521_v13  ;;  %v449_v60 = vmul.f32 %v3521_v1, %v2521_v13  ;;  %v3522_v20 = vstv %s2343_s2  ;;  %v403_v55 = vadd.f32 %v401_v25, %v387_v15 }
  0x7b   :  { %v450_v62 = vmul.f32 %v3522_v20, %v2521_v13  ;;  %v425_v0 = vadd.f32 %v423_v9, %v421_v6  ;;  %v433_v5 = vadd.f32 %v431_v19, %v429_v18  ;;  %v3523_v14 = vstv %s2345_s12 }
  0x7c   :  { %v451_v61 = vmul.f32 %v3523_v14, %v2521_v13  ;;  %v453_v3 = vrot.slane %v445_v58, 1  ;;  %v457_v22 = vrot.slane %v446_v11, 2  ;;  %v461_v57 = vrot.slane %v447_v50, 3 }
  0x7d   :  { %v465_v16 = vrot.slane %v449_v60, 1  ;;  %v3525_v54 = vstv %s3517_s26  ;;  %v437_v23 = vadd.f32 %v435_v4, %v433_v5  ;;  %v469_v1 = vrot.slane %v450_v62, 2 }
  0x7e   :  { %v404_v53 = vadd.f32 %v403_v55, %v3525_v54  ;;  %v473_v15 = vrot.slane %v451_v61, 3  ;;  %v455_v9 = vadd.f32 %v453_v3, %v444_v7  ;;  %v3526_v25 = vstv %s2401_s8  ;;  %s3674_s8 = sld [smem:[#allocation38_spill]] }
  0x7f   :  { %v467_v19 = vadd.f32 %v465_v16, %v448_v59  ;;  %v482_v6 = vmul.f32 %v3526_v25, %v2521_v13  ;;  %v3527_v18 = vstv %s2416_s7  ;;  %v439_v11 = vrot.slane %v437_v23, 4 }
  0x80   :  { %v483_v58 = vmul.f32 %v3527_v18, %v2521_v13  ;;  %405 = vst [vmem:[#allocation2 + $0x4] sm:$0x1] %v404_v53  ;;  %v3529_v50 = vstv %s2418_s3  ;;  %v3530_v20 = vstv %s2445_s16  ;;  %v3531_v62 = vstv %s3524_s27 }
  0x81   :  { %v484_v60 = vmul.f32 %v3529_v50, %v2521_v13  ;;  %v485_v4 = vmul.f32 %v3530_v20, %v2521_v13  ;;  %v486_v55 = vmul.f32 %v3531_v62, %v2521_v13  ;;  %v459_v7 = vadd.f32 %v457_v22, %v455_v9 }
  0x82   :  { %v471_v59 = vadd.f32 %v469_v1, %v467_v19  ;;  %v3532_v5 = vstv %s2454_s19  ;;  %v3533_v61 = vstv %s2464_s18  ;;  %v441_v16 = vadd.f32 %v439_v11, %v425_v0 }
  0x83   :  { %v487_v14 = vmul.f32 %v3532_v5, %v2521_v13  ;;  %v488_v3 = vmul.f32 %v3533_v61, %v2521_v13  ;;  %v3534_v54 = vstv %s2466_s20  ;;  %v491_v23 = vrot.slane %v483_v58, 1 }
  0x84   :  { %v489_v53 = vmul.f32 %v3534_v54, %v2521_v13  ;;  %v495_v25 = vrot.slane %v484_v60, 2  ;;  %v463_v18 = vadd.f32 %v461_v57, %v459_v7  ;;  %v475_v50 = vadd.f32 %v473_v15, %v471_v59 }
  0x85   :  { %v503_v20 = vrot.slane %v487_v14, 1  ;;  %v3535_v52 = vstv %s3528_s28  ;;  %v493_v22 = vadd.f32 %v491_v23, %v482_v6  ;;  %v507_v1 = vrot.slane %v488_v3, 2 }
  0x86   :  { %v442_v62 = vadd.f32 %v441_v16, %v3535_v52  ;;  %v477_v9 = vrot.slane %v475_v50, 4  ;;  %v499_v19 = vrot.slane %v485_v4, 3  ;;  %v511_v51 = vrot.slane %v489_v53, 3 }
  0x87   :  { %v505_v5 = vadd.f32 %v503_v20, %v486_v55  ;;  %v497_v0 = vadd.f32 %v495_v25, %v493_v22  ;;  %v3536_v13 = vstv %s2385_s13  ;;  %v3537_v7 = vstv %s2480_s30 }
  0x88   :  { %443 = vst [vmem:[#allocation2 + $0x5] sm:$0x1] %v442_v62  ;;  %v479_v11 = vadd.f32 %v477_v9, %v463_v18  ;;  %v557_v6 = vsub.s32 4, %v1676_v8  ;;  %v565_v4 = vsub.s32 6, %v1676_v8  ;;  %vm592_vm10 = vcmp.eq.s32.totalorder %v1692_v17, %v2090_v56 }
  0x89   :  { %v509_v61 = vadd.f32 %v507_v1, %v505_v5  ;;  %v501_v54 = vadd.f32 %v499_v19, %v497_v0  ;;  %vm600_vm9 = vcmp.eq.s32.totalorder %v1704_v21, %v2090_v56  ;;  %v3538_v16 = vmov 0 }
  0x8a   :  { %v480_v58 = vadd.f32 %v479_v11, %v3536_v13  ;;  %v2634_v55 = vrot.slane %v1681_v10, %v557_v6  ;;  %v2637_v14 = vrot.slane %v1681_v10, %v565_v4  ;;  %vm2654_vm5 = vmpackc.low %vm600_vm9, %vm592_vm10  ;;  %vm594_vm7 = vcmp.eq.s32.totalorder %v1692_v17, %v2146_v2  ;;  %v3641_v13 = vld [vmem:[#allocation31_spill] sm:$0xff] }
  0x8b   :  { %v513_v60 = vadd.f32 %v511_v51, %v509_v61  ;;  %v3539_v16 = vsel %vm2654_vm5, 4294967295, %v3538_v16  ;;  %vm602_vm2 = vcmp.eq.s32.totalorder %v1704_v21, %v2146_v2  ;;  %v3540_v53 = vmov 0  ;;  %v3639_v61 = vld [vmem:[#allocation30_spill] sm:$0xff] }
  0x8c   :  { %481 = vst [vmem:[#allocation2 + $0x6] sm:$0x1] %v480_v58  ;;  %vm575_vm15 = vcmp.eq.s32.totalorder %v1676_v8, %v2634_v55  ;;  %vm583_vm12 = vcmp.eq.s32.totalorder %v1685_v12, %v2634_v55  ;;  %vm577_vm3 = vcmp.eq.s32.totalorder %v1676_v8, %v2637_v14  ;;  %vm585_vm0 = vcmp.eq.s32.totalorder %v1685_v12, %v2637_v14  ;;  %v3643_v58 = vld [vmem:[#allocation32_spill] sm:$0xff] }
  0x8d   :  { %v515_v57 = vrot.slane %v513_v60, 4  ;;  %vm2662_vm13 = vmpackc.low %vm583_vm12, %vm575_vm15  ;;  %vm591_vm8 = vcmp.eq.s32.totalorder %v1692_v17, %v2634_v55  ;;  %vm599_vm4 = vcmp.eq.s32.totalorder %v1704_v21, %v2634_v55  ;;  %v3542_v12 = vmov 0  ;;  %v3647_v60 = vld [vmem:[#allocation34_spill] sm:$0xff] }
  0x8e   :  { %v3541_v53 = vsel %vm2662_vm13, 4294967295, %v3540_v53  ;;  %vm2672_vm10 = vmpackc.low %vm585_vm0, %vm577_vm3  ;;  %vm593_vm9 = vcmp.eq.s32.totalorder %v1692_v17, %v2637_v14  ;;  %vm601_vm15 = vcmp.eq.s32.totalorder %v1704_v21, %v2637_v14  ;;  %v3544_v23 = vmov 0 }
  0x8f   :  { %v517_v15 = vadd.f32 %v515_v57, %v501_v54  ;;  %v3543_v12 = vsel %vm2672_vm10, 4294967295, %v3542_v12  ;;  %vm2680_vm12 = vmpackc.low %vm602_vm2, %vm594_vm7  ;;  %vm608_vm1 = vcmp.eq.s32.totalorder %v1744_v27, %v2090_v56  ;;  %vm616_vm14 = vcmp.eq.s32.totalorder %v1747_v28, %v2090_v56  ;;  %v3645_v54 = vld [vmem:[#allocation33_spill] sm:$0xff]  ;;  %v3649_v57 = vld [vmem:[#allocation35_spill] sm:$0xff] }
  0x90   :  { %v3545_v23 = vsel %vm2680_vm12, 4294967295, %v3544_v23  ;;  %vm2690_vm0 = vmpackc.low %vm599_vm4, %vm591_vm8  ;;  %v3546_v25 = vmov 0  ;;  %vm610_vm2 = vcmp.eq.s32.totalorder %v1744_v27, %v2146_v2  ;;  %vm618_vm3 = vcmp.eq.s32.totalorder %v1747_v28, %v2146_v2 }
  0x91   :  { %v518_v52 = vadd.f32 %v517_v15, %v3537_v7  ;;  %v3547_v25 = vsel %vm2690_vm0, 4294967295, %v3546_v25  ;;  %vm2704_vm7 = vmpackc.low %vm601_vm15, %vm593_vm9  ;;  %v3548_v17 = vmov 0  ;;  %vm607_vm4 = vcmp.eq.s32.totalorder %v1744_v27, %v2634_v55  ;;  %v3651_v15 = vld [vmem:[#allocation36_spill] sm:$0xff]  ;;  %v1241_v7 = vld [vmem:[%s3674_s8] ss:$0 sm:$0xff] }
  0x92   :  { %v3549_v17 = vsel %vm2704_vm7, 4294967295, %v3548_v17  ;;  %vm615_vm8 = vcmp.eq.s32.totalorder %v1747_v28, %v2634_v55  ;;  %v3550_v21 = vmov 0  ;;  %vm609_vm9 = vcmp.eq.s32.totalorder %v1744_v27, %v2637_v14 }
  0x93   :  { %519 = vst [vmem:[#allocation2 + $0x7] sm:$0x1] %v518_v52  ;;  %vm617_vm15 = vcmp.eq.s32.totalorder %v1747_v28, %v2637_v14  ;;  %v3552_v18 = vmov 0  ;;  %v3554_v50 = vmov 0   ;;  %v3555_v20 = vmov 0 }
  0x94   :  { %v3557_v27 = vmov 0  ;;  %v3559_v28 = vmov 0  ;;  %v3561_v62 = vmov 0  ;;  %v3563_v22 = vmov 0 }
  0x95   :  { %vm650_vm11 = vcmp.eq.s32.totalorder %v1811_v36, %v2146_v2  ;;  %v3569_v1 = vmov 0  ;;  %v3571_v9 = vmov 0  ;;  %v3577_v19 = vmov 0 }
  0x96   :  { %v3585_v0 = vmov 0 }
  0x9a   :  { %v520_v59 = vld [vmem:[#allocation2] sm:$0xff] }
  0x9b   :  { %v2639_v3 = vpack.c.bf16 %v520_v59, %v520_v59 }
  0x9d   :  { %v892_v51 = vunpack.c.l.bf16 %v2639_v3 }
  0x9f   :  { %v893_v10 = vsub.f32 %v520_v59, %v892_v51 }
  0xa1   :  { %v2670_v8 = vpack.c.bf16 %v893_v10, %v893_v10 }
  0xa3   :  { %928 = vmatmul.mubr.bf16.vlgmr.msra.gmra.mrb[0].mxu1 %v2670_v8  ;;  %969 = vmatmul.mubr.bf16.vlgmr.msra.gmra.mrb[4].mxu0 %v2670_v8 }
  0xa4   :  { %1344 = vmatpush1.bf16.msk.msra.mxu1 %vm2662_vm13, %v3457_v63  ;;  %1376 = vmatpush1.bf16.msk.msra.mxu0 %vm2672_vm10, %v3457_v63  ;;  %vm2718_vm13 = vmpackc.low %vm616_vm14, %vm608_vm1  ;;  %vm626_vm1 = vcmp.eq.s32.totalorder %v1775_v31, %v2146_v2 }
  0xa5   :  { %1346 = vmatprep.subr.msk.bf16.mxu1 %vm2654_vm5, %v3457_v63  ;;  %1378 = vmatprep.subr.msk.bf16.mxu0 %vm2680_vm12, %v3457_v63  ;;  %v3551_v21 = vsel %vm2718_vm13, 4294967295, %v3550_v21  ;;  %vm2726_vm10 = vmpackc.low %vm618_vm3, %vm610_vm2  ;;  %vm624_vm5 = vcmp.eq.s32.totalorder %v1775_v31, %v2090_v56  ;;  %vm632_vm12 = vcmp.eq.s32.totalorder %v1778_v32, %v2090_v56  ;;  %vm634_vm2 = vcmp.eq.s32.totalorder %v1778_v32, %v2146_v2 }
  0xa6   :  { %v3553_v18 = vsel %vm2726_vm10, 4294967295, %v3552_v18  ;;  %1009 = vmatprep.mubr.bf16.mxu1 %v3554_v50  ;;  %1050 = vmatprep.mubr.bf16.mxu0 %v3554_v50  ;;  %vm2736_vm14 = vmpackc.low %vm615_vm8, %vm607_vm4  ;;  %vm623_vm4 = vcmp.eq.s32.totalorder %v1775_v31, %v2634_v55  ;;  %vm631_vm8 = vcmp.eq.s32.totalorder %v1778_v32, %v2634_v55 }
  0xa7   :  { %v3556_v20 = vsel %vm2736_vm14, 4294967295, %v3555_v20  ;;  %vm2750_vm3 = vmpackc.low %vm617_vm15, %vm609_vm9  ;;  %vm625_vm9 = vcmp.eq.s32.totalorder %v1775_v31, %v2637_v14  ;;  %vm633_vm15 = vcmp.eq.s32.totalorder %v1778_v32, %v2637_v14  ;;  %v3565_v31 = vmov 0 }
  0xa8   :  { %1348 = vmatpush1.bf16.msk.msra.mxu1 %vm2690_vm0, %v3457_v63  ;;  %1380 = vmatpush1.bf16.msk.msra.mxu0 %vm2704_vm7, %v3457_v63  ;;  %v3558_v27 = vsel %vm2750_vm3, 4294967295, %v3557_v27  ;;  %vm2764_vm0 = vmpackc.low %vm632_vm12, %vm624_vm5  ;;  %vm642_vm12 = vcmp.eq.s32.totalorder %v1795_v34, %v2146_v2  ;;  %v3567_v32 = vmov 0 }
  0xa9   :  { %1350 = vmatprep.subr.msk.bf16.mxu1 %vm2718_vm13, %v3457_v63  ;;  %1382 = vmatprep.subr.msk.bf16.mxu0 %vm2726_vm10, %v3457_v63  ;;  %v3560_v28 = vsel %vm2764_vm0, 4294967295, %v3559_v28  ;;  %vm2772_vm7 = vmpackc.low %vm634_vm2, %vm626_vm1  ;;  %vm640_vm13 = vcmp.eq.s32.totalorder %v1795_v34, %v2090_v56  ;;  %vm648_vm10 = vcmp.eq.s32.totalorder %v1811_v36, %v2090_v56  ;;  %vm639_vm2 = vcmp.eq.s32.totalorder %v1795_v34, %v2634_v55 }
  0xaa   :  { %v3562_v62 = vsel %vm2772_vm7, 4294967295, %v3561_v62  ;;  %vm2780_vm5 = vmpackc.low %vm631_vm8, %vm623_vm4  ;;  %vm647_vm4 = vcmp.eq.s32.totalorder %v1811_v36, %v2634_v55 }
  0xab   :  { %v3564_v22 = vsel %vm2780_vm5, 4294967295, %v3563_v22  ;;  %vm2794_vm1 = vmpackc.low %vm633_vm15, %vm625_vm9  ;;  %vm641_vm9 = vcmp.eq.s32.totalorder %v1795_v34, %v2637_v14  ;;  %vm649_vm15 = vcmp.eq.s32.totalorder %v1811_v36, %v2637_v14  ;;  %v3573_v34 = vmov 0 }
  0xac   :  { %1352 = vmatpush1.bf16.msk.msra.mxu1 %vm2736_vm14, %v3457_v63  ;;  %1384 = vmatpush1.bf16.msk.msra.mxu0 %vm2750_vm3, %v3457_v63  ;;  %v3566_v31 = vsel %vm2794_vm1, 4294967295, %v3565_v31  ;;  %vm2808_vm8 = vmpackc.low %vm648_vm10, %vm640_vm13  ;;  %vm658_vm10 = vcmp.eq.s32.totalorder %v1894_v41, %v2146_v2  ;;  %vm666_vm14 = vcmp.eq.s32.totalorder %v1897_v42, %v2146_v2  ;;  %v3575_v36 = vmov 0 }
  0xad   :  { %1354 = vmatprep.subr.msk.bf16.mxu1 %vm2764_vm0, %v3457_v63  ;;  %1386 = vmatprep.subr.msk.bf16.mxu0 %vm2772_vm7, %v3457_v63  ;;  %v3568_v32 = vsel %vm2808_vm8, 4294967295, %v3567_v32  ;;  %vm2816_vm3 = vmpackc.low %vm650_vm11, %vm642_vm12  ;;  %vm656_vm0 = vcmp.eq.s32.totalorder %v1894_v41, %v2090_v56  ;;  %vm664_vm7 = vcmp.eq.s32.totalorder %v1897_v42, %v2090_v56  ;;  %vm655_vm12 = vcmp.eq.s32.totalorder %v1894_v41, %v2634_v55 }
  0xae   :  { %v3570_v1 = vsel %vm2816_vm3, 4294967295, %v3569_v1  ;;  %vm2824_vm13 = vmpackc.low %vm647_vm4, %vm639_vm2  ;;  %vm663_vm2 = vcmp.eq.s32.totalorder %v1897_v42, %v2634_v55 }
  0xaf   :  { %v3572_v9 = vsel %vm2824_vm13, 4294967295, %v3571_v9  ;;  %vm2838_vm11 = vmpackc.low %vm649_vm15, %vm641_vm9  ;;  %vm657_vm9 = vcmp.eq.s32.totalorder %v1894_v41, %v2637_v14  ;;  %vm665_vm15 = vcmp.eq.s32.totalorder %v1897_v42, %v2637_v14 }
  0xb0   :  { %1356 = vmatpush1.bf16.msk.msra.mxu1 %vm2780_vm5, %v3457_v63  ;;  %1388 = vmatpush1.bf16.msk.msra.mxu0 %vm2794_vm1, %v3457_v63  ;;  %v3574_v34 = vsel %vm2838_vm11, 4294967295, %v3573_v34  ;;  %vm2852_vm4 = vmpackc.low %vm664_vm7, %vm656_vm0  ;;  %vm674_vm7 = vcmp.eq.s32.totalorder %v1947_v45, %v2146_v2  ;;  %vm682_vm5 = vcmp.eq.s32.totalorder %v1950_v46, %v2146_v2 }
  0xb1   :  { %1358 = vmatprep.subr.msk.bf16.mxu1 %vm2808_vm8, %v3457_v63  ;;  %1390 = vmatprep.subr.msk.bf16.mxu0 %vm2816_vm3, %v3457_v63  ;;  %v3576_v36 = vsel %vm2852_vm4, 4294967295, %v3575_v36  ;;  %vm2860_vm1 = vmpackc.low %vm666_vm14, %vm658_vm10  ;;  %vm672_vm8 = vcmp.eq.s32.totalorder %v1947_v45, %v2090_v56  ;;  %vm680_vm3 = vcmp.eq.s32.totalorder %v1950_v46, %v2090_v56  ;;  %vm671_vm10 = vcmp.eq.s32.totalorder %v1947_v45, %v2634_v55 }
  0xb2   :  { %v3578_v19 = vsel %vm2860_vm1, 4294967295, %v3577_v19  ;;  %vm2868_vm0 = vmpackc.low %vm663_vm2, %vm655_vm12  ;;  %vm679_vm12 = vcmp.eq.s32.totalorder %v1950_v46, %v2634_v55 }
  0xb3   :  { %vm2882_vm14 = vmpackc.low %vm665_vm15, %vm657_vm9  ;;  %vm673_vm9 = vcmp.eq.s32.totalorder %v1947_v45, %v2637_v14  ;;  %vm681_vm15 = vcmp.eq.s32.totalorder %v1950_v46, %v2637_v14 }
  0xb4   :  { %1360 = vmatpush1.bf16.msk.msra.mxu1 %vm2824_vm13, %v3457_v63  ;;  %1392 = vmatpush1.bf16.msk.msra.mxu0 %vm2838_vm11, %v3457_v63  ;;  %vm2896_vm2 = vmpackc.low %vm680_vm3, %vm672_vm8  ;;  %vm690_vm8 = vcmp.eq.s32.totalorder %v1972_v48, %v2146_v2  ;;  %vm698_vm13 = vcmp.eq.s32.totalorder %v1975_v49, %v2146_v2 }
  0xb5   :  { %1362 = vmatprep.subr.msk.bf16.mxu1 %vm2852_vm4, %v3457_v63  ;;  %1394 = vmatprep.subr.msk.bf16.mxu0 %vm2860_vm1, %v3457_v63  ;;  %vm2904_vm11 = vmpackc.low %vm682_vm5, %vm674_vm7  ;;  %vm688_vm4 = vcmp.eq.s32.totalorder %v1972_v48, %v2090_v56  ;;  %vm696_vm1 = vcmp.eq.s32.totalorder %v1975_v49, %v2090_v56 }
  0xb6   :  { %v3586_v0 = vsel %vm2904_vm11, 4294967295, %v3585_v0  ;;  %vm2912_vm3 = vmpackc.low %vm679_vm12, %vm671_vm10  ;;  %vm687_vm10 = vcmp.eq.s32.totalorder %v1972_v48, %v2634_v55  ;;  %vm695_vm12 = vcmp.eq.s32.totalorder %v1975_v49, %v2634_v55 }
  0xb7   :  { %vm2926_vm5 = vmpackc.low %vm681_vm15, %vm673_vm9  ;;  %vm689_vm15 = vcmp.eq.s32.totalorder %v1972_v48, %v2637_v14 }
  0xb8   :  { %1364 = vmatpush1.bf16.msk.msra.mxu1 %vm2868_vm0, %v3457_v63  ;;  %1396 = vmatpush1.bf16.msk.msra.mxu0 %vm2882_vm14, %v3457_v63  ;;  %vm2936_vm7 = vmpackc.low %vm696_vm1, %vm688_vm4  ;;  %vm3599_vm4 = vnez %v3344_v26  ;;  %v3613_v26 = vld [vmem:[#allocation10_spill] sm:$0xff] }
  0xb9   :  { %1366 = vmatprep.subr.msk.bf16.mxu1 %vm2896_vm2, %v3457_v63  ;;  %1398 = vmatprep.subr.msk.bf16.mxu0 %vm2904_vm11, %v3457_v63  ;;  %vm2944_vm9 = vmpackc.low %vm698_vm13, %vm690_vm8  ;;  %vm697_vm11 = vcmp.eq.s32.totalorder %v1975_v49, %v2637_v14  ;;  %vm3601_vm8 = vnez %v3348_v30  ;;  %v3617_v30 = vld [vmem:[#allocation13_spill] sm:$0xff]  ;;  %v3637_v49 = vld [vmem:[#allocation29_spill] sm:$0xff] }
  0xba   :  { %vm2958_vm1 = vmpackc.low %vm695_vm12, %vm687_vm10  ;;  %vm3602_vm10 = vnez %v3350_v33  ;;  %vm3604_vm12 = vnez %v3354_v37  ;;  %v3619_v33 = vld [vmem:[#allocation14_spill] sm:$0xff]  ;;  %v3623_v37 = vld [vmem:[#allocation16_spill] sm:$0xff] }
  0xbb   :  { %vm2968_vm13 = vmpackc.low %vm697_vm11, %vm689_vm15  ;;  %vm3600_vm11 = vnez %v3346_v29  ;;  %vm3605_vm15 = vnez %v3356_v38  ;;  %v3615_v29 = vld [vmem:[#allocation11_spill] sm:$0xff]  ;;  %v3625_v38 = vld [vmem:[#allocation17_spill] sm:$0xff] }
  0xbc   :  { %1368 = vmatpush1.bf16.msk.msra.mxu1 %vm2912_vm3, %v3457_v63  ;;  %1400 = vmatpush1.bf16.msk.msra.mxu0 %vm2926_vm5, %v3457_v63 }
  0xbd   :  { %1370 = vmatprep.subr.msk.bf16.mxu1 %vm2936_vm7, %v3457_v63  ;;  %1402 = vmatprep.subr.msk.bf16.mxu0 %vm2944_vm9, %v3457_v63 }
  0xc0   :  { %1372 = vmatpush1.bf16.msk.msra.mxu1 %vm2958_vm1, %v3457_v63  ;;  %1404 = vmatpush1.bf16.msk.msra.mxu0 %vm2968_vm13, %v3457_v63 }
  0xc1   :  { %1406 = vmatprep.subr.msk.bf16.mxu1 %vm1720_vm6, %v3457_v63  ;;  %1438 = vmatprep.subr.msk.bf16.mxu0 %vm3599_vm4, %v3457_v63  ;;  %vm3603_vm6 = vnez %v3352_v35  ;;  %vm3606_vm4 = vnez %v3359_v39  ;;  %v3621_v35 = vld [vmem:[#allocation15_spill] sm:$0xff]  ;;  %v3627_v39 = vld [vmem:[#allocation20_spill] sm:$0xff] }
  0xc3   :  { %1010 = vmatmul.mubr.bf16.vlgmr.msra.gmra.mrb[4].mxu1 %v2670_v8  ;;  %1051 = vmatmul.mubr.bf16.vlgmr.msra.gmra.mrb[8].mxu0 %v2670_v8 }
  0xc4   :  { %1408 = vmatpush1.bf16.msk.msra.mxu1 %vm3600_vm11, %v3457_v63  ;;  %1440 = vmatpush1.bf16.msk.msra.mxu0 %vm3601_vm8, %v3457_v63  ;;  %vm3607_vm11 = vnez %v3362_v40  ;;  %vm3608_vm8 = vnez %v3366_v43  ;;  %v3629_v40 = vld [vmem:[#allocation21_spill] sm:$0xff]  ;;  %v3631_v43 = vld [vmem:[#allocation23_spill] sm:$0xff] }
  0xc5   :  { %1410 = vmatprep.subr.msk.bf16.mxu1 %vm3602_vm10, %v3457_v63  ;;  %1442 = vmatprep.subr.msk.bf16.mxu0 %vm3603_vm6, %v3457_v63  ;;  %vm3609_vm10 = vnez %v3370_v44  ;;  %vm3610_vm6 = vnez %v3374_v47  ;;  %v3633_v44 = vld [vmem:[#allocation25_spill] sm:$0xff]  ;;  %v3635_v47 = vld [vmem:[#allocation28_spill] sm:$0xff] }
  0xc6   :  { %1091 = vmatprep.mubr.bf16.mxu1 %v3554_v50  ;;  %1132 = vmatprep.mubr.bf16.mxu0 %v3554_v50 }
  0xc8   :  { %1412 = vmatpush1.bf16.msk.msra.mxu1 %vm3604_vm12, %v3457_v63  ;;  %1444 = vmatpush1.bf16.msk.msra.mxu0 %vm3605_vm15, %v3457_v63  ;;  %vm3612_vm12 = vnez %v3611_v24  ;;  %vm3614_vm15 = vnez %v3613_v26 }
  0xc9   :  { %1414 = vmatprep.subr.msk.bf16.mxu1 %vm3606_vm4, %v3457_v63  ;;  %1446 = vmatprep.subr.msk.bf16.mxu0 %vm3607_vm11, %v3457_v63  ;;  %vm3616_vm4 = vnez %v3615_v29  ;;  %vm3618_vm11 = vnez %v3617_v30 }
  0xcc   :  { %1416 = vmatpush1.bf16.msk.msra.mxu1 %vm3608_vm8, %v3457_v63  ;;  %1448 = vmatpush1.bf16.msk.msra.mxu0 %vm3609_vm10, %v3457_v63  ;;  %vm3620_vm8 = vnez %v3619_v33  ;;  %vm3622_vm10 = vnez %v3621_v35 }
  0xcd   :  { %1418 = vmatprep.subr.msk.bf16.mxu1 %vm3610_vm6, %v3457_v63  ;;  %1450 = vmatprep.subr.msk.bf16.mxu0 %vm3612_vm12, %v3457_v63  ;;  %vm3624_vm6 = vnez %v3623_v37  ;;  %vm3626_vm12 = vnez %v3625_v38 }
  0xd0   :  { %1420 = vmatpush1.bf16.msk.msra.mxu1 %vm3614_vm15, %v3457_v63  ;;  %1452 = vmatpush1.bf16.msk.msra.mxu0 %vm3616_vm4, %v3457_v63  ;;  %vm3628_vm15 = vnez %v3627_v39  ;;  %vm3630_vm4 = vnez %v3629_v40 }
  0xd1   :  { %1422 = vmatprep.subr.msk.bf16.mxu1 %vm3618_vm11, %v3457_v63  ;;  %1454 = vmatprep.subr.msk.bf16.mxu0 %vm3620_vm8, %v3457_v63  ;;  %vm3632_vm11 = vnez %v3631_v43  ;;  %vm3634_vm8 = vnez %v3633_v44 }
  0xd4   :  { %1424 = vmatpush1.bf16.msk.msra.mxu1 %vm3622_vm10, %v3457_v63  ;;  %1456 = vmatpush1.bf16.msk.msra.mxu0 %vm3624_vm6, %v3457_v63  ;;  %vm3636_vm10 = vnez %v3635_v47  ;;  %vm3638_vm6 = vnez %v3637_v49 }
  0xd5   :  { %1426 = vmatprep.subr.msk.bf16.mxu1 %vm3626_vm12, %v3457_v63  ;;  %1458 = vmatprep.subr.msk.bf16.mxu0 %vm3628_vm15, %v3457_v63  ;;  %vm3640_vm12 = vnez %v3639_v61  ;;  %vm3642_vm15 = vnez %v3641_v13 }
  0xd8   :  { %1428 = vmatpush1.bf16.msk.msra.mxu1 %vm3630_vm4, %v3457_v63  ;;  %1460 = vmatpush1.bf16.msk.msra.mxu0 %vm3632_vm11, %v3457_v63  ;;  %vm3644_vm4 = vnez %v3643_v58  ;;  %vm3646_vm11 = vnez %v3645_v54 }
  0xd9   :  { %1430 = vmatprep.subr.msk.bf16.mxu1 %vm3634_vm8, %v3457_v63  ;;  %1462 = vmatprep.subr.msk.bf16.mxu0 %vm3636_vm10, %v3457_v63  ;;  %vm3648_vm8 = vnez %v3647_v60  ;;  %vm3650_vm10 = vnez %v3649_v57 }
  0xdc   :  { %1432 = vmatpush1.bf16.msk.msra.mxu1 %vm3638_vm6, %v3457_v63  ;;  %1464 = vmatpush1.bf16.msk.msra.mxu0 %vm3640_vm12, %v3457_v63  ;;  %vm3652_vm6 = vnez %v3651_v15  ;;  %vm3653_vm12 = vnez %v3541_v53 }
  0xdd   :  { %1434 = vmatprep.subr.msk.bf16.mxu1 %vm3642_vm15, %v3457_v63  ;;  %1466 = vmatprep.subr.msk.bf16.mxu0 %vm3644_vm4, %v3457_v63  ;;  %vm3654_vm15 = vnez %v3543_v12  ;;  %vm3655_vm4 = vnez %v3539_v16 }
  0xe0   :  { %1436 = vmatpush1.bf16.msk.msra.mxu1 %vm3646_vm11, %v3457_v63  ;;  %1468 = vmatpush1.bf16.msk.msra.mxu0 %vm3648_vm8, %v3457_v63  ;;  %vm3656_vm11 = vnez %v3545_v23  ;;  %vm3657_vm8 = vnez %v3547_v25 }
  0xe1   :  { %1470 = vmatprep.subr.msk.bf16.mxu1 %vm3650_vm10, %v3457_v63  ;;  %1502 = vmatprep.subr.msk.bf16.mxu0 %vm3652_vm6, %v3457_v63  ;;  %vm3658_vm10 = vnez %v3549_v17  ;;  %vm3659_vm6 = vnez %v3551_v21 }
  0xe3   :  { %1092 = vmatmul.mubr.bf16.vlgmr.msra.gmra.mrb[0].mxu1 %v2639_v3  ;;  %1133 = vmatmul.mubr.bf16.vlgmr.msra.gmra.mrb[4].mxu0 %v2639_v3 }
  0xe4   :  { %1472 = vmatpush1.bf16.msk.msra.mxu1 %vm3653_vm12, %v3457_v63  ;;  %1504 = vmatpush1.bf16.msk.msra.mxu0 %vm3654_vm15, %v3457_v63  ;;  %vm3660_vm12 = vnez %v3553_v18  ;;  %vm3661_vm15 = vnez %v3556_v20 }
  0xe5   :  { %1474 = vmatprep.subr.msk.bf16.mxu1 %vm3655_vm4, %v3457_v63  ;;  %1506 = vmatprep.subr.msk.bf16.mxu0 %vm3656_vm11, %v3457_v63  ;;  %vm3662_vm4 = vnez %v3558_v27  ;;  %vm3663_vm11 = vnez %v3560_v28 }
  0xe6   :  { %1173 = vmatprep.mubr.bf16.mxu1 %v3554_v50  ;;  %1214 = vmatprep.mubr.bf16.mxu0 %v3554_v50 }
  0xe8   :  { %1476 = vmatpush1.bf16.msk.msra.mxu1 %vm3657_vm8, %v3457_v63  ;;  %1508 = vmatpush1.bf16.msk.msra.mxu0 %vm3658_vm10, %v3457_v63  ;;  %vm3664_vm8 = vnez %v3562_v62  ;;  %vm3665_vm10 = vnez %v3564_v22 }
  0xe9   :  { %1478 = vmatprep.subr.msk.bf16.mxu1 %vm3659_vm6, %v3457_v63  ;;  %1510 = vmatprep.subr.msk.bf16.mxu0 %vm3660_vm12, %v3457_v63  ;;  %vm3666_vm6 = vnez %v3566_v31  ;;  %vm3667_vm12 = vnez %v3568_v32 }
  0xec   :  { %1480 = vmatpush1.bf16.msk.msra.mxu1 %vm3661_vm15, %v3457_v63  ;;  %1512 = vmatpush1.bf16.msk.msra.mxu0 %vm3662_vm4, %v3457_v63  ;;  %vm3668_vm15 = vnez %v3570_v1  ;;  %vm3669_vm4 = vnez %v3572_v9 }
  0xed   :  { %1482 = vmatprep.subr.msk.bf16.mxu1 %vm3663_vm11, %v3457_v63  ;;  %1514 = vmatprep.subr.msk.bf16.mxu0 %vm3664_vm8, %v3457_v63  ;;  %vm3670_vm11 = vnez %v3574_v34  ;;  %vm3671_vm8 = vnez %v3576_v36 }
  0xf0   :  { %1484 = vmatpush1.bf16.msk.msra.mxu1 %vm3665_vm10, %v3457_v63  ;;  %1516 = vmatpush1.bf16.msk.msra.mxu0 %vm3666_vm6, %v3457_v63  ;;  %vm3672_vm10 = vnez %v3578_v19  ;;  %vm3673_vm6 = vnez %v3586_v0 }
  0xf1   :  { %1486 = vmatprep.subr.msk.bf16.mxu1 %vm3667_vm12, %v3457_v63  ;;  %1518 = vmatprep.subr.msk.bf16.mxu0 %vm3668_vm15, %v3457_v63 }
  0xf4   :  { %1488 = vmatpush1.bf16.msk.msra.mxu1 %vm3669_vm4, %v3457_v63  ;;  %1520 = vmatpush1.bf16.msk.msra.mxu0 %vm3670_vm11, %v3457_v63 }
  0xf5   :  { %1490 = vmatprep.subr.msk.bf16.mxu1 %vm3671_vm8, %v3457_v63  ;;  %1522 = vmatprep.subr.msk.bf16.mxu0 %vm3672_vm10, %v3457_v63 }
  0xf8   :  { %1492 = vmatpush1.bf16.msk.msra.mxu1 %vm2868_vm0, %v3457_v63  ;;  %1524 = vmatpush1.bf16.msk.msra.mxu0 %vm2882_vm14, %v3457_v63  ;;  %vm140_vm0 = vcmask 130048  }
  0xf9   :  { %1494 = vmatprep.subr.msk.bf16.mxu1 %vm2896_vm2, %v3457_v63  ;;  %1526 = vmatprep.subr.msk.bf16.mxu0 %vm3673_vm6, %v3457_v63 }
  0xfc   :  { %1496 = vmatpush1.bf16.msk.msra.mxu1 %vm2912_vm3, %v3457_v63  ;;  %1528 = vmatpush1.bf16.msk.msra.mxu0 %vm2926_vm5, %v3457_v63  ;;  %v136_v52 = vpop.f32.mrb[0].mxu0 }
  0xfd   :  { %1498 = vmatprep.subr.msk.bf16.mxu1 %vm2936_vm7, %v3457_v63  ;;  %1530 = vmatprep.subr.msk.bf16.mxu0 %vm2944_vm9, %v3457_v63  ;;  %v137_v6 = vadd.f32 %v1241_v7, %v136_v52  ;;  %v1548_v4 = vpop.f32.mrb[1].mxu0 }
  0xff   :  { %141 = vst.msk [vmem:[%s3675_s9] sm:$0xff] %vm140_vm0, %v137_v6 }
 0x100   :  { %1500 = vmatpush1.bf16.msk.msra.mxu1 %vm2958_vm1, %v3457_v63  ;;  %1532 = vmatpush1.bf16.msk.msra.mxu0 %vm2968_vm13, %v3457_v63 }
 0x103   :  { %1174 = vmatmul.mubr.bf16.vlgmr.msra.gmra.mrb[4].mxu1 %v2639_v3  ;;  %1215 = vmatmul.mubr.bf16.vlgmr.msra.gmra.mrb[8].mxu0 %v2639_v3 }
 0x1b6   :  { %v1093_v55 = vpop.f32.mrb[0].mxu1  ;;  %v1134_v59 = vpop.f32.mrb[4].mxu0 }
 0x1b7   :  { %1223 = vst [vmem:[%s3676_s5] sm:$0xff] %v1093_v55  ;;  %1225 = vst [vmem:[%s3676_s5 + $0x10] sm:$0xff] %v1134_v59  ;;  %v1095_v63 = vpop.f32.mrb[1].mxu1  ;;  %v1136_v14 = vpop.f32.mrb[5].mxu0 }
 0x1b8   :  { %1224 = vst [vmem:[%s3676_s5 + $0x8] sm:$0xff] %v1095_v63  ;;  %1226 = vst [vmem:[%s3676_s5 + $0x18] sm:$0xff] %v1136_v14  ;;  %v1097_v3 = vpop.f32.mrb[2].mxu1  ;;  %v1138_v51 = vpop.f32.mrb[6].mxu0 }
 0x1b9   :  { %v1098_v10 = vpop.f32.mrb[3].mxu1  ;;  %v1139_v16 = vpop.f32.mrb[7].mxu0 }
 0x1d6   :  { %v1175_v53 = vpop.f32.mrb[4].mxu1  ;;  %v1216_v8 = vpop.f32.mrb[8].mxu0 }
 0x1d7   :  { %1227 = vst [vmem:[%s3676_s5 + $0x20] sm:$0xff] %v1175_v53  ;;  %1229 = vst [vmem:[%s3676_s5 + $0x30] sm:$0xff] %v1216_v8  ;;  %v1177_v12 = vpop.f32.mrb[5].mxu1  ;;  %v1218_v23 = vpop.f32.mrb[9].mxu0 }
 0x1d8   :  { %1228 = vst [vmem:[%s3676_s5 + $0x28] sm:$0xff] %v1177_v12  ;;  %1230 = vst [vmem:[%s3676_s5 + $0x38] sm:$0xff] %v1218_v23  ;;  %v1179_v25 = vpop.f32.mrb[6].mxu1  ;;  %v1220_v17 = vpop.f32.mrb[10].mxu0 }
 0x1d9   :  { %v1180_v21 = vpop.f32.mrb[7].mxu1  ;;  %v1221_v18 = vpop.f32.mrb[11].mxu0 }
 0x1da   :  { %1239 = vsyncpa [#allocation4], 1 }
 0x1db   :  { %1240 = vsyncpa [#allocation6], 1 }

</bundles_post_ra>
